<compile_context>
chip_gen: v6e
topology: v6e:2x2x1
jax: 0.10.0
libtpu: 0.0.40
codegen_flags: <defaults>
</compile_context>

<pallas_src>
import functools
import math

import numpy as np
import jax
import jax.numpy as jnp
from jax.experimental import pallas as pl
from jax.experimental.pallas import tpu as pltpu

# ----------------------------- config constants -----------------------------
DOWN_RATIO_ = 2
CONV_TYPE_ = "drconv"
HIST_AS_GUIDE_ = False
GUIDE_FEATURE_FROM_HIST_ = True
DRCONV_POSITION_ = (1, 1)
REGION_NUM_ = 2


# ------------------------------ Pallas kernel -------------------------------
def _drconv_layer_kernel(x_ref, h_ref, mask_ref, wk_ref, wg_ref, bg_ref,
                         scale_ref, shift_ref, out_ref, guide_ref, *, img_w):
    """Fused DRConv layer for one batch element (lane axis = H*W).

    x_ref    : (1, Cin, N)  bf16   layer input, flattened NCHW
    h_ref    : (1, Cg,  N)  f32    histmap, flattened NCHW
    mask_ref : (9, N)       f32    per-tap zero-padding masks (shared)
    wk_ref   : (1, R*Cout, 9*Cin) bf16  per-batch dynamic kernels
    wg_ref   : (R, 9*Cg)    f32    static guide-conv weights
    bg_ref   : (R, 1)       f32    guide-conv bias
    scale/shift : (Cout, 1) f32    folded eval BatchNorm affine
    out_ref  : (1, Cout, N) bf16/f32
    guide_ref: (1, R, N)    f32    guide features (pre-argmax), module output
    """
    R = guide_ref.shape[1]
    Cout = out_ref.shape[1]
    N = out_ref.shape[2]

    mask = mask_ref[...]                                    # (9, N) f32

    def im2col(v):
        # v: (C, N) f32 -> (9*C, N) f32, row order = tap*C + c (tap = ky*3+kx).
        taps = []
        t = 0
        for ky in range(3):
            for kx in range(3):
                d = (ky - 1) * img_w + (kx - 1)             # flat pixel offset
                rolled = v if d == 0 else pltpu.roll(v, shift=(-d) % N, axis=1)
                taps.append(rolled * mask[t:t + 1, :])      # zero-pad borders
                t += 1
        return jnp.concatenate(taps, axis=0)

    # --- Guide-feature 3x3 conv on histmap (kept in f32: argmax robustness). ---
    hcol = im2col(h_ref[0])                                              # (9*Cg, N)
    g = jnp.dot(wg_ref[...], hcol,
                preferred_element_type=jnp.float32) + bg_ref[...]        # (R, N) f32
    guide_ref[0] = g

    # --- DR correlation: all taps and regions in ONE MXU dot (K = 9*Cin). ---
    xcol = im2col(x_ref[0].astype(jnp.float32)).astype(jnp.bfloat16)     # (9*Cin, N)
    y = jnp.dot(wk_ref[0], xcol, preferred_element_type=jnp.float32)     # (R*Cout, N)

    # --- Per-pixel region argmax select (lowest index wins ties; NaN -> 0). ---
    best = g[0:1, :]
    idx = jnp.zeros((1, N), jnp.int32)
    for r in range(1, R):
        better = g[r:r + 1, :] > best
        best = jnp.where(better, g[r:r + 1, :], best)
        idx = jnp.where(better, r, idx)
    acc = jnp.zeros((Cout, N), jnp.float32)
    for r in range(R):
        sel = (idx == r).astype(jnp.float32)                             # (1, N)
        acc = acc + sel * y[r * Cout:(r + 1) * Cout, :]

    # --- Folded eval-mode BatchNorm + ReLU epilogue (f32), store in out dtype. ---
    out_ref[0] = jnp.maximum(acc * scale_ref[...] + shift_ref[...],
                             0.0).astype(out_ref.dtype)


def drconv_layer_pallas(x_flat, h_flat, masks, wk, wg, bg, scale, shift,
                        img_w, out_dtype):
    """One fused DRConv(x, guide=hist) -> BN(eval) -> ReLU layer (grid over B)."""
    B, Cin, N = x_flat.shape
    Cg = h_flat.shape[1]
    RC = wk.shape[1]
    R = wg.shape[0]
    Cout = RC // R

    kernel = functools.partial(_drconv_layer_kernel, img_w=img_w)

    def _nbytes(a):
        return int(a.size) * a.dtype.itemsize

    flops = 2 * B * N * (RC * 9 * Cin + R * 9 * Cg)
    bytes_accessed = (sum(_nbytes(a) for a in (x_flat, h_flat, masks, wk, wg,
                                               bg, scale, shift))
                      + B * Cout * N * jnp.dtype(out_dtype).itemsize
                      + B * R * N * 4)

    out, guide = pl.pallas_call(
        kernel,
        out_shape=(jax.ShapeDtypeStruct((B, Cout, N), out_dtype),
                   jax.ShapeDtypeStruct((B, R, N), jnp.float32)),
        grid=(B,),
        in_specs=[
            pl.BlockSpec((1, Cin, N), lambda b: (b, 0, 0)),
            pl.BlockSpec((1, Cg, N), lambda b: (b, 0, 0)),
            pl.BlockSpec((9, N), lambda b: (0, 0)),
            pl.BlockSpec((1, RC, 9 * Cin), lambda b: (b, 0, 0)),
            pl.BlockSpec((R, 9 * Cg), lambda b: (0, 0)),
            pl.BlockSpec((R, 1), lambda b: (0, 0)),
            pl.BlockSpec((Cout, 1), lambda b: (0, 0)),
            pl.BlockSpec((Cout, 1), lambda b: (0, 0)),
        ],
        out_specs=(pl.BlockSpec((1, Cout, N), lambda b: (b, 0, 0)),
                   pl.BlockSpec((1, R, N), lambda b: (b, 0, 0))),
        compiler_params=pltpu.CompilerParams(
            dimension_semantics=("parallel",),
            vmem_limit_bytes=48 * 1024 * 1024),   # explicit: v7x physical VMEM is 64 MiB
        cost_estimate=pl.CostEstimate(flops=flops, transcendentals=0,
                                      bytes_accessed=bytes_accessed),
    )(x_flat, h_flat, masks, wk, wg, bg, scale, shift)
    return out, guide


# --------------------------------- JAX glue ---------------------------------
def _tap_masks(H, W):
    """(9, H*W) f32 masks zeroing the rows/cols that a padded 3x3 tap reads OOB."""
    m = np.ones((9, H, W), np.float32)
    t = 0
    for ky in range(3):
        for kx in range(3):
            if ky == 0:
                m[t, 0, :] = 0.0
            if ky == 2:
                m[t, H - 1, :] = 0.0
            if kx == 0:
                m[t, :, 0] = 0.0
            if kx == 2:
                m[t, :, W - 1] = 0.0
            t += 1
    return jnp.asarray(m.reshape(9, H * W))


def _interp_matrix(n_in, n_out):
    """align_corners=True bilinear interpolation matrix (n_out, n_in)."""
    if n_in == 1:
        return jnp.ones((n_out, 1), jnp.float32)
    rows = []
    for i in range(n_out):
        src = i * (n_in - 1) / (n_out - 1) if n_out > 1 else 0.0
        lo = min(int(math.floor(src)), n_in - 2)
        frac = src - lo
        row = [0.0] * n_in
        row[lo] += 1.0 - frac
        row[lo + 1] += frac
        rows.append(row)
    return jnp.asarray(rows, jnp.float32)


def bilinear_upsample_align_corners(x, scale):
    """x: (B, C, H, W) -> (B, C, H*scale, W*scale), bilinear, align_corners=True."""
    _, _, H, W = x.shape
    Mh = _interp_matrix(H, int(H * scale))
    Mw = _interp_matrix(W, int(W * scale))
    return jnp.einsum("oh,bchw,pw->bcop", Mh, x, Mw)


def _pool_matrix(n, o):
    """AdaptiveAvgPool averaging matrix (o, n) with PyTorch floor/ceil bin edges."""
    rows = []
    for i in range(o):
        s = (i * n) // o
        e = -(-((i + 1) * n) // o)
        rows.append([1.0 / (e - s) if s <= j < e else 0.0 for j in range(n)])
    return jnp.asarray(rows, jnp.float32)


def adaptive_avg_pool2d(x, out_size):
    """PyTorch AdaptiveAvgPool2d as a single einsum. x: NCHW."""
    Ph = _pool_matrix(x.shape[2], out_size)
    Pw = _pool_matrix(x.shape[3], out_size)
    return jnp.einsum("oh,bchw,pw->bcop", Ph, x, Pw)


def grouped_1x1(x, w, b, groups):
    """Grouped 1x1 conv. x: (B, Cin, H, W), w: (Cout, Cin//groups, 1, 1)."""
    B, Cin, H, W = x.shape
    Cout = w.shape[0]
    xg = x.reshape(B, groups, Cin // groups, H, W)
    wg = w[:, :, 0, 0].reshape(groups, Cout // groups, Cin // groups)
    out = jnp.einsum("bgihw,goi->bgohw", xg, wg).reshape(B, Cout, H, W)
    return out + b[None, :, None, None]


def dynamic_kernels(x, p, R):
    """DRConv2d.conv_kernel pipeline -> per-batch weights (B, R*Cout, 9*Cin), bf16."""
    x = x.astype(jnp.float32)
    B, Cin = x.shape[0], x.shape[1]
    Cout = p["wk2"].shape[0] // (R * Cin)
    pooled = adaptive_avg_pool2d(x, 3)                                   # (B, Cin, 3, 3)
    t = jnp.einsum("bchw,oc->bohw", pooled, p["wk1"][:, :, 0, 0]) \
        + p["bk1"][None, :, None, None]
    t = jax.nn.sigmoid(t)
    t = grouped_1x1(t, p["wk2"], p["bk2"], groups=R)                     # (B, R*Cin*Cout, 3, 3)
    kdyn = t.reshape(B, R, Cout, Cin, 3, 3)                              # (r, co, ci, ky, kx)
    wk = jnp.transpose(kdyn, (0, 1, 2, 4, 5, 3)).reshape(B, R * Cout, 9 * Cin)
    return wk.astype(jnp.bfloat16)


def up_forward(x1, x2, histmap, params):
    """Up.forward: upsample x1, pad, cat with x2, HistGuidedDRDoubleConv(x, histmap)."""
    x1u = bilinear_upsample_align_corners(x1, DOWN_RATIO_)
    diffY = x2.shape[2] - x1u.shape[2]
    diffX = x2.shape[3] - x1u.shape[3]
    x1p = jnp.pad(x1u, ((0, 0), (0, 0),
                        (diffY // 2, diffY - diffY // 2),
                        (diffX // 2, diffX - diffX // 2)))
    x = jnp.concatenate([x2, x1p], axis=1)                               # (B, in_ch, H, W)
    B, Cin, H, W = x.shape
    N = H * W
    R = REGION_NUM_

    masks = _tap_masks(H, W)                                             # (9, N) f32
    h_flat = histmap.reshape(B, histmap.shape[1], N).astype(jnp.float32)
    x_flat = x.reshape(B, Cin, N).astype(jnp.bfloat16)

    def guide_w(p):
        # (R, Cg, 3, 3) -> (R, 9*Cg), col order tap*Cg + cg; kept in f32.
        return jnp.transpose(p["wg"], (0, 2, 3, 1)).reshape(R, -1).astype(jnp.float32)

    # ---- layer 1 (intermediate emitted in bf16, consumed by layer 2) ----
    wk1 = dynamic_kernels(x, params["conv1"], R)
    y1, g1 = drconv_layer_pallas(
        x_flat, h_flat, masks, wk1, guide_w(params["conv1"]),
        params["conv1"]["bg"].reshape(-1, 1).astype(jnp.float32),
        params["bn1_scale"].reshape(-1, 1), params["bn1_shift"].reshape(-1, 1),
        W, jnp.bfloat16)
    Cmid = y1.shape[1]

    # ---- layer 2 (dynamic kernels depend on the layer-1 activation) ----
    y1_img = y1.reshape(B, Cmid, H, W)
    wk2 = dynamic_kernels(y1_img, params["conv2"], R)
    y2, g2 = drconv_layer_pallas(
        y1, h_flat, masks, wk2, guide_w(params["conv2"]),
        params["conv2"]["bg"].reshape(-1, 1).astype(jnp.float32),
        params["bn2_scale"].reshape(-1, 1), params["bn2_shift"].reshape(-1, 1),
        W, jnp.float32)

    res = y2.reshape(B, -1, H, W)
    return res, (g1.reshape(B, R, H, W), g2.reshape(B, R, H, W))


# ------------------------------ parameter init -------------------------------
def init_params(key, in_ch, mid_ch, out_ch, hist_ch, R):
    ks = list(jax.random.split(key, 24))

    def nrm(k, shape, s=0.1):
        return (jax.random.normal(k, shape) * s).astype(jnp.float32)

    def drconv_params(k0, k1, k2, k3, k4, k5, cin, cout):
        return {
            "wk1": nrm(k0, (R * R, cin, 1, 1)),
            "bk1": nrm(k1, (R * R,)),
            "wk2": nrm(k2, (R * cin * cout, R, 1, 1)),
            "bk2": nrm(k3, (R * cin * cout,)),
            "wg": nrm(k4, (R, hist_ch, 3, 3)),
            "bg": nrm(k5, (R,)),
        }

    def bn_fold(kg, kb, km, kv, c, eps=1e-5):
        gamma = 1.0 + nrm(kg, (c,))
        beta = nrm(kb, (c,))
        mean = nrm(km, (c,))
        var = jnp.abs(nrm(kv, (c,))) + 1.0
        scale = gamma / jnp.sqrt(var + eps)
        shift = beta - mean * scale
        return scale.astype(jnp.float32), shift.astype(jnp.float32)

    bn1_scale, bn1_shift = bn_fold(ks[12], ks[13], ks[14], ks[15], mid_ch)
    bn2_scale, bn2_shift = bn_fold(ks[16], ks[17], ks[18], ks[19], out_ch)
    return {
        "conv1": drconv_params(*ks[0:6], in_ch, mid_ch),
        "conv2": drconv_params(*ks[6:12], mid_ch, out_ch),
        "bn1_scale": bn1_scale, "bn1_shift": bn1_shift,
        "bn2_scale": bn2_scale, "bn2_shift": bn2_shift,
    }


# ------------------------------------ main -----------------------------------
if __name__ == "__main__":
    key = jax.random.PRNGKey(0)
    k1, k2, k3, kp = jax.random.split(key, 4)

    B, H, W = 2, 16, 16
    c_x1, c_x2, hist_ch = 4, 4, 4
    in_ch = c_x1 + c_x2          # concat of skip (x2) and upsampled (x1)
    out_ch = 4
    mid_ch = in_ch // 2

    # NCHW inputs (PyTorch convention); x1 comes from the deeper level (half spatial).
    x1 = jax.random.normal(k1, (B, c_x1, H // DOWN_RATIO_, W // DOWN_RATIO_), jnp.float32)
    x2 = jax.random.normal(k2, (B, c_x2, H, W), jnp.float32)
    histmap = jax.random.normal(k3, (B, hist_ch, H, W), jnp.float32)

    params = init_params(kp, in_ch, mid_ch, out_ch, hist_ch, REGION_NUM_)

    fwd = jax.jit(functools.partial(up_forward, params=params))
    res, guide_features = fwd(x1, x2, histmap)
    jax.block_until_ready(res)

    assert res.shape == (B, out_ch, H, W), res.shape
    assert guide_features[0].shape == (B, REGION_NUM_, H, W)
    assert guide_features[1].shape == (B, REGION_NUM_, H, W)
    assert bool(jnp.all(jnp.isfinite(res)))
    # TODO(synk): BatchNorm is eval-mode (running stats) — training-mode batch
    # statistics were not replicated.
    print("KERNEL_OK")
</pallas_src>

<mosaic_0001>
module attributes {stable_mosaic.version = 11 : i64} {
  func.func @_drconv_layer_kernel(%arg0: i32, %arg1: memref<1x8x256xbf16, #tpu.memory_space<vmem>>, %arg2: memref<1x4x256xf32, #tpu.memory_space<vmem>>, %arg3: memref<9x256xf32, #tpu.memory_space<vmem>>, %arg4: memref<1x8x72xbf16, #tpu.memory_space<vmem>>, %arg5: memref<2x36xf32, #tpu.memory_space<vmem>>, %arg6: memref<2x1xf32, #tpu.memory_space<vmem>>, %arg7: memref<4x1xf32, #tpu.memory_space<vmem>>, %arg8: memref<4x1xf32, #tpu.memory_space<vmem>>, %arg9: memref<1x4x256xbf16, #tpu.memory_space<vmem>>, %arg10: memref<1x2x256xf32, #tpu.memory_space<vmem>>) attributes {dimension_semantics = [#tpu.dimension_semantics<parallel>], iteration_bounds = array<i64: 2>, scalar_prefetch = 0 : i64, scratch_operands = 0 : i64, tpu.core_type = #tpu.core_type<tc>, window_params = [{transform_indices = @transform_0, window_bounds = array<i64: 1, 8, 256>}, {transform_indices = @transform_1, window_bounds = array<i64: 1, 4, 256>}, {pipeline_mode = #tpu.pipeline_mode<synchronous>, transform_indices = @transform_2, window_bounds = array<i64: 9, 256>}, {transform_indices = @transform_3, window_bounds = array<i64: 1, 8, 72>}, {pipeline_mode = #tpu.pipeline_mode<synchronous>, transform_indices = @transform_4, window_bounds = array<i64: 2, 36>}, {pipeline_mode = #tpu.pipeline_mode<synchronous>, transform_indices = @transform_5, window_bounds = array<i64: 2, 1>}, {pipeline_mode = #tpu.pipeline_mode<synchronous>, transform_indices = @transform_6, window_bounds = array<i64: 4, 1>}, {pipeline_mode = #tpu.pipeline_mode<synchronous>, transform_indices = @transform_7, window_bounds = array<i64: 4, 1>}, {transform_indices = @transform_8, window_bounds = array<i64: 1, 4, 256>}, {transform_indices = @transform_9, window_bounds = array<i64: 1, 2, 256>}]} {
    %c0 = arith.constant 0 : index
    %c0_0 = arith.constant 0 : index
    %0 = vector.load %arg3[%c0, %c0_0] : memref<9x256xf32, #tpu.memory_space<vmem>>, vector<9x256xf32>
    %c0_1 = arith.constant 0 : index
    %c0_2 = arith.constant 0 : index
    %c0_3 = arith.constant 0 : index
    %1 = vector.load %arg2[%c0_1, %c0_2, %c0_3] : memref<1x4x256xf32, #tpu.memory_space<vmem>>, vector<1x4x256xf32>
    %2 = vector.shape_cast %1 : vector<1x4x256xf32> to vector<4x256xf32>
    %c17_i32 = arith.constant 17 : i32
    %3 = tpu.dynamic_rotate %2 by %c17_i32 dim 1 : vector<4x256xf32>, i32 -> vector<4x256xf32>
    %4 = vector.extract_strided_slice %0 {offsets = [0, 0], sizes = [1, 256], strides = [1, 1]} : vector<9x256xf32> to vector<1x256xf32>
    %5 = vector.broadcast %4 : vector<1x256xf32> to vector<4x256xf32>
    %6 = arith.mulf %3, %5 : vector<4x256xf32>
    %c16_i32 = arith.constant 16 : i32
    %7 = tpu.dynamic_rotate %2 by %c16_i32 dim 1 : vector<4x256xf32>, i32 -> vector<4x256xf32>
    %8 = vector.extract_strided_slice %0 {offsets = [1, 0], sizes = [1, 256], strides = [1, 1]} : vector<9x256xf32> to vector<1x256xf32>
    %9 = vector.broadcast %8 : vector<1x256xf32> to vector<4x256xf32>
    %10 = arith.mulf %7, %9 : vector<4x256xf32>
    %c15_i32 = arith.constant 15 : i32
    %11 = tpu.dynamic_rotate %2 by %c15_i32 dim 1 : vector<4x256xf32>, i32 -> vector<4x256xf32>
    %12 = vector.extract_strided_slice %0 {offsets = [2, 0], sizes = [1, 256], strides = [1, 1]} : vector<9x256xf32> to vector<1x256xf32>
    %13 = vector.broadcast %12 : vector<1x256xf32> to vector<4x256xf32>
    %14 = arith.mulf %11, %13 : vector<4x256xf32>
    %c1_i32 = arith.constant 1 : i32
    %15 = tpu.dynamic_rotate %2 by %c1_i32 dim 1 : vector<4x256xf32>, i32 -> vector<4x256xf32>
    %16 = vector.extract_strided_slice %0 {offsets = [3, 0], sizes = [1, 256], strides = [1, 1]} : vector<9x256xf32> to vector<1x256xf32>
    %17 = vector.broadcast %16 : vector<1x256xf32> to vector<4x256xf32>
    %18 = arith.mulf %15, %17 : vector<4x256xf32>
    %19 = vector.extract_strided_slice %0 {offsets = [4, 0], sizes = [1, 256], strides = [1, 1]} : vector<9x256xf32> to vector<1x256xf32>
    %20 = vector.broadcast %19 : vector<1x256xf32> to vector<4x256xf32>
    %21 = arith.mulf %2, %20 : vector<4x256xf32>
    %c255_i32 = arith.constant 255 : i32
    %22 = tpu.dynamic_rotate %2 by %c255_i32 dim 1 : vector<4x256xf32>, i32 -> vector<4x256xf32>
    %23 = vector.extract_strided_slice %0 {offsets = [5, 0], sizes = [1, 256], strides = [1, 1]} : vector<9x256xf32> to vector<1x256xf32>
    %24 = vector.broadcast %23 : vector<1x256xf32> to vector<4x256xf32>
    %25 = arith.mulf %22, %24 : vector<4x256xf32>
    %c241_i32 = arith.constant 241 : i32
    %26 = tpu.dynamic_rotate %2 by %c241_i32 dim 1 : vector<4x256xf32>, i32 -> vector<4x256xf32>
    %27 = vector.extract_strided_slice %0 {offsets = [6, 0], sizes = [1, 256], strides = [1, 1]} : vector<9x256xf32> to vector<1x256xf32>
    %28 = vector.broadcast %27 : vector<1x256xf32> to vector<4x256xf32>
    %29 = arith.mulf %26, %28 : vector<4x256xf32>
    %c240_i32 = arith.constant 240 : i32
    %30 = tpu.dynamic_rotate %2 by %c240_i32 dim 1 : vector<4x256xf32>, i32 -> vector<4x256xf32>
    %31 = vector.extract_strided_slice %0 {offsets = [7, 0], sizes = [1, 256], strides = [1, 1]} : vector<9x256xf32> to vector<1x256xf32>
    %32 = vector.broadcast %31 : vector<1x256xf32> to vector<4x256xf32>
    %33 = arith.mulf %30, %32 : vector<4x256xf32>
    %c239_i32 = arith.constant 239 : i32
    %34 = tpu.dynamic_rotate %2 by %c239_i32 dim 1 : vector<4x256xf32>, i32 -> vector<4x256xf32>
    %35 = vector.extract_strided_slice %0 {offsets = [8, 0], sizes = [1, 256], strides = [1, 1]} : vector<9x256xf32> to vector<1x256xf32>
    %36 = vector.broadcast %35 : vector<1x256xf32> to vector<4x256xf32>
    %37 = arith.mulf %34, %36 : vector<4x256xf32>
    %38 = tpu.concatenate %6, %10, %14, %18, %21, %25, %29, %33, %37 in 0 : vector<4x256xf32>, vector<4x256xf32>, vector<4x256xf32>, vector<4x256xf32>, vector<4x256xf32>, vector<4x256xf32>, vector<4x256xf32>, vector<4x256xf32>, vector<4x256xf32> -> vector<36x256xf32>
    %c0_4 = arith.constant 0 : index
    %c0_5 = arith.constant 0 : index
    %39 = vector.load %arg5[%c0_4, %c0_5] : memref<2x36xf32, #tpu.memory_space<vmem>>, vector<2x36xf32>
    %cst = arith.constant dense<0.000000e+00> : vector<2x256xf32>
    %40 = tpu.matmul %39, %38, %cst {dimension_numbers = #tpu.dot_dimension_numbers<[1], [0], [0], [1], [0, 0, 1, 1], [], []>} : vector<2x36xf32>, vector<36x256xf32>, vector<2x256xf32> -> vector<2x256xf32>
    %c0_6 = arith.constant 0 : index
    %c0_7 = arith.constant 0 : index
    %41 = vector.load %arg6[%c0_6, %c0_7] : memref<2x1xf32, #tpu.memory_space<vmem>>, vector<2x1xf32>
    %42 = vector.broadcast %41 : vector<2x1xf32> to vector<2x256xf32>
    %43 = arith.addf %40, %42 : vector<2x256xf32>
    %c0_8 = arith.constant 0 : index
    %c0_9 = arith.constant 0 : index
    %c0_10 = arith.constant 0 : index
    %44 = vector.load %arg10[%c0_8, %c0_9, %c0_10] : memref<1x2x256xf32, #tpu.memory_space<vmem>>, vector<1x2x256xf32>
    %45 = vector.shape_cast %44 : vector<1x2x256xf32> to vector<2x256xf32>
    %46 = vector.shape_cast %43 : vector<2x256xf32> to vector<1x2x256xf32>
    tpu.vector_store %arg10[%c0_8, %c0_9, %c0_10], %46 {strides = array<i32>} : memref<1x2x256xf32, #tpu.memory_space<vmem>>, vector<1x2x256xf32>,
    %c0_11 = arith.constant 0 : index
    %c0_12 = arith.constant 0 : index
    %c0_13 = arith.constant 0 : index
    %47 = vector.load %arg1[%c0_11, %c0_12, %c0_13] : memref<1x8x256xbf16, #tpu.memory_space<vmem>>, vector<1x8x256xbf16>
    %48 = vector.shape_cast %47 : vector<1x8x256xbf16> to vector<8x256xbf16>
    %49 = arith.extf %48 : vector<8x256xbf16> to vector<8x256xf32>
    %c17_i32_14 = arith.constant 17 : i32
    %50 = tpu.dynamic_rotate %49 by %c17_i32_14 dim 1 : vector<8x256xf32>, i32 -> vector<8x256xf32>
    %51 = vector.extract_strided_slice %0 {offsets = [0, 0], sizes = [1, 256], strides = [1, 1]} : vector<9x256xf32> to vector<1x256xf32>
    %52 = vector.broadcast %51 : vector<1x256xf32> to vector<8x256xf32>
    %53 = arith.mulf %50, %52 : vector<8x256xf32>
    %c16_i32_15 = arith.constant 16 : i32
    %54 = tpu.dynamic_rotate %49 by %c16_i32_15 dim 1 : vector<8x256xf32>, i32 -> vector<8x256xf32>
    %55 = vector.extract_strided_slice %0 {offsets = [1, 0], sizes = [1, 256], strides = [1, 1]} : vector<9x256xf32> to vector<1x256xf32>
    %56 = vector.broadcast %55 : vector<1x256xf32> to vector<8x256xf32>
    %57 = arith.mulf %54, %56 : vector<8x256xf32>
    %c15_i32_16 = arith.constant 15 : i32
    %58 = tpu.dynamic_rotate %49 by %c15_i32_16 dim 1 : vector<8x256xf32>, i32 -> vector<8x256xf32>
    %59 = vector.extract_strided_slice %0 {offsets = [2, 0], sizes = [1, 256], strides = [1, 1]} : vector<9x256xf32> to vector<1x256xf32>
    %60 = vector.broadcast %59 : vector<1x256xf32> to vector<8x256xf32>
    %61 = arith.mulf %58, %60 : vector<8x256xf32>
    %c1_i32_17 = arith.constant 1 : i32
    %62 = tpu.dynamic_rotate %49 by %c1_i32_17 dim 1 : vector<8x256xf32>, i32 -> vector<8x256xf32>
    %63 = vector.extract_strided_slice %0 {offsets = [3, 0], sizes = [1, 256], strides = [1, 1]} : vector<9x256xf32> to vector<1x256xf32>
    %64 = vector.broadcast %63 : vector<1x256xf32> to vector<8x256xf32>
    %65 = arith.mulf %62, %64 : vector<8x256xf32>
    %66 = vector.extract_strided_slice %0 {offsets = [4, 0], sizes = [1, 256], strides = [1, 1]} : vector<9x256xf32> to vector<1x256xf32>
    %67 = vector.broadcast %66 : vector<1x256xf32> to vector<8x256xf32>
    %68 = arith.mulf %49, %67 : vector<8x256xf32>
    %c255_i32_18 = arith.constant 255 : i32
    %69 = tpu.dynamic_rotate %49 by %c255_i32_18 dim 1 : vector<8x256xf32>, i32 -> vector<8x256xf32>
    %70 = vector.extract_strided_slice %0 {offsets = [5, 0], sizes = [1, 256], strides = [1, 1]} : vector<9x256xf32> to vector<1x256xf32>
    %71 = vector.broadcast %70 : vector<1x256xf32> to vector<8x256xf32>
    %72 = arith.mulf %69, %71 : vector<8x256xf32>
    %c241_i32_19 = arith.constant 241 : i32
    %73 = tpu.dynamic_rotate %49 by %c241_i32_19 dim 1 : vector<8x256xf32>, i32 -> vector<8x256xf32>
    %74 = vector.extract_strided_slice %0 {offsets = [6, 0], sizes = [1, 256], strides = [1, 1]} : vector<9x256xf32> to vector<1x256xf32>
    %75 = vector.broadcast %74 : vector<1x256xf32> to vector<8x256xf32>
    %76 = arith.mulf %73, %75 : vector<8x256xf32>
    %c240_i32_20 = arith.constant 240 : i32
    %77 = tpu.dynamic_rotate %49 by %c240_i32_20 dim 1 : vector<8x256xf32>, i32 -> vector<8x256xf32>
    %78 = vector.extract_strided_slice %0 {offsets = [7, 0], sizes = [1, 256], strides = [1, 1]} : vector<9x256xf32> to vector<1x256xf32>
    %79 = vector.broadcast %78 : vector<1x256xf32> to vector<8x256xf32>
    %80 = arith.mulf %77, %79 : vector<8x256xf32>
    %c239_i32_21 = arith.constant 239 : i32
    %81 = tpu.dynamic_rotate %49 by %c239_i32_21 dim 1 : vector<8x256xf32>, i32 -> vector<8x256xf32>
    %82 = vector.extract_strided_slice %0 {offsets = [8, 0], sizes = [1, 256], strides = [1, 1]} : vector<9x256xf32> to vector<1x256xf32>
    %83 = vector.broadcast %82 : vector<1x256xf32> to vector<8x256xf32>
    %84 = arith.mulf %81, %83 : vector<8x256xf32>
    %85 = tpu.concatenate %53, %57, %61, %65, %68, %72, %76, %80, %84 in 0 : vector<8x256xf32>, vector<8x256xf32>, vector<8x256xf32>, vector<8x256xf32>, vector<8x256xf32>, vector<8x256xf32>, vector<8x256xf32>, vector<8x256xf32>, vector<8x256xf32> -> vector<72x256xf32>
    %86 = arith.truncf %85 : vector<72x256xf32> to vector<72x256xbf16>
    %c0_22 = arith.constant 0 : index
    %c0_23 = arith.constant 0 : index
    %c0_24 = arith.constant 0 : index
    %87 = vector.load %arg4[%c0_22, %c0_23, %c0_24] : memref<1x8x72xbf16, #tpu.memory_space<vmem>>, vector<1x8x72xbf16>
    %88 = vector.shape_cast %87 : vector<1x8x72xbf16> to vector<8x72xbf16>
    %cst_25 = arith.constant dense<0.000000e+00> : vector<8x256xf32>
    %89 = tpu.matmul %88, %86, %cst_25 {dimension_numbers = #tpu.dot_dimension_numbers<[1], [0], [0], [1], [0, 0, 1, 1], [], []>} : vector<8x72xbf16>, vector<72x256xbf16>, vector<8x256xf32> -> vector<8x256xf32>
    %90 = vector.extract_strided_slice %43 {offsets = [0, 0], sizes = [1, 256], strides = [1, 1]} : vector<2x256xf32> to vector<1x256xf32>
    %c0_i32 = arith.constant 0 : i32
    %91 = vector.broadcast %c0_i32 : i32 to vector<1x256xi32>
    %92 = vector.extract_strided_slice %43 {offsets = [1, 0], sizes = [1, 256], strides = [1, 1]} : vector<2x256xf32> to vector<1x256xf32>
    %93 = arith.cmpf ogt, %92, %90 : vector<1x256xf32>
    %c1_i32_26 = arith.constant 1 : i32
    %94 = vector.broadcast %c1_i32_26 : i32 to vector<1x256xi32>
    %95 = arith.select %93, %94, %91 : vector<1x256xi1>, vector<1x256xi32>
    %cst_27 = arith.constant 0.000000e+00 : f32
    %96 = vector.broadcast %cst_27 : f32 to vector<4x256xf32>
    %c0_i32_28 = arith.constant 0 : i32
    %97 = vector.broadcast %c0_i32_28 : i32 to vector<1x256xi32>
    %98 = arith.cmpi eq, %95, %97 : vector<1x256xi32>
    %99 = arith.extui %98 : vector<1x256xi1> to vector<1x256xi32>
    %100 = arith.sitofp %99 : vector<1x256xi32> to vector<1x256xf32>
    %101 = vector.extract_strided_slice %89 {offsets = [0, 0], sizes = [4, 256], strides = [1, 1]} : vector<8x256xf32> to vector<4x256xf32>
    %102 = vector.broadcast %100 : vector<1x256xf32> to vector<4x256xf32>
    %103 = arith.mulf %102, %101 : vector<4x256xf32>
    %104 = arith.addf %96, %103 : vector<4x256xf32>
    %c1_i32_29 = arith.constant 1 : i32
    %105 = vector.broadcast %c1_i32_29 : i32 to vector<1x256xi32>
    %106 = arith.cmpi eq, %95, %105 : vector<1x256xi32>
    %107 = arith.extui %106 : vector<1x256xi1> to vector<1x256xi32>
    %108 = arith.sitofp %107 : vector<1x256xi32> to vector<1x256xf32>
    %109 = vector.extract_strided_slice %89 {offsets = [4, 0], sizes = [4, 256], strides = [1, 1]} : vector<8x256xf32> to vector<4x256xf32>
    %110 = vector.broadcast %108 : vector<1x256xf32> to vector<4x256xf32>
    %111 = arith.mulf %110, %109 : vector<4x256xf32>
    %112 = arith.addf %104, %111 : vector<4x256xf32>
    %c0_30 = arith.constant 0 : index
    %c0_31 = arith.constant 0 : index
    %113 = vector.load %arg7[%c0_30, %c0_31] : memref<4x1xf32, #tpu.memory_space<vmem>>, vector<4x1xf32>
    %114 = vector.broadcast %113 : vector<4x1xf32> to vector<4x256xf32>
    %115 = arith.mulf %112, %114 : vector<4x256xf32>
    %c0_32 = arith.constant 0 : index
    %c0_33 = arith.constant 0 : index
    %116 = vector.load %arg8[%c0_32, %c0_33] : memref<4x1xf32, #tpu.memory_space<vmem>>, vector<4x1xf32>
    %117 = vector.broadcast %116 : vector<4x1xf32> to vector<4x256xf32>
    %118 = arith.addf %115, %117 : vector<4x256xf32>
    %cst_34 = arith.constant 0.000000e+00 : f32
    %119 = vector.broadcast %cst_34 : f32 to vector<4x256xf32>
    %120 = arith.maximumf %118, %119 : vector<4x256xf32>
    %121 = arith.truncf %120 : vector<4x256xf32> to vector<4x256xbf16>
    %c0_35 = arith.constant 0 : index
    %c0_36 = arith.constant 0 : index
    %c0_37 = arith.constant 0 : index
    %122 = vector.load %arg9[%c0_35, %c0_36, %c0_37] : memref<1x4x256xbf16, #tpu.memory_space<vmem>>, vector<1x4x256xbf16>
    %123 = vector.shape_cast %122 : vector<1x4x256xbf16> to vector<4x256xbf16>
    %124 = vector.shape_cast %121 : vector<4x256xbf16> to vector<1x4x256xbf16>
    tpu.vector_store %arg9[%c0_35, %c0_36, %c0_37], %124 {strides = array<i32>} : memref<1x4x256xbf16, #tpu.memory_space<vmem>>, vector<1x4x256xbf16>,
    return
  }
  func.func @transform_0(%arg0: i32) -> (i32, i32, i32) {
    %c0_i32 = arith.constant 0 : i32
    %c0_i32_0 = arith.constant 0 : i32
    %c0_i32_1 = arith.constant 0 : i32
    return %arg0, %c0_i32, %c0_i32_0 : i32, i32, i32
  }
  func.func @transform_1(%arg0: i32) -> (i32, i32, i32) {
    %c0_i32 = arith.constant 0 : i32
    %c0_i32_0 = arith.constant 0 : i32
    %c0_i32_1 = arith.constant 0 : i32
    return %arg0, %c0_i32, %c0_i32_0 : i32, i32, i32
  }
  func.func @transform_2(%arg0: i32) -> (i32, i32) {
    %c0_i32 = arith.constant 0 : i32
    %c0_i32_0 = arith.constant 0 : i32
    %c0_i32_1 = arith.constant 0 : i32
    return %c0_i32, %c0_i32_0 : i32, i32
  }
  func.func @transform_3(%arg0: i32) -> (i32, i32, i32) {
    %c0_i32 = arith.constant 0 : i32
    %c0_i32_0 = arith.constant 0 : i32
    %c0_i32_1 = arith.constant 0 : i32
    return %arg0, %c0_i32, %c0_i32_0 : i32, i32, i32
  }
  func.func @transform_4(%arg0: i32) -> (i32, i32) {
    %c0_i32 = arith.constant 0 : i32
    %c0_i32_0 = arith.constant 0 : i32
    %c0_i32_1 = arith.constant 0 : i32
    return %c0_i32, %c0_i32_0 : i32, i32
  }
  func.func @transform_5(%arg0: i32) -> (i32, i32) {
    %c0_i32 = arith.constant 0 : i32
    %c0_i32_0 = arith.constant 0 : i32
    %c0_i32_1 = arith.constant 0 : i32
    return %c0_i32, %c0_i32_0 : i32, i32
  }
  func.func @transform_6(%arg0: i32) -> (i32, i32) {
    %c0_i32 = arith.constant 0 : i32
    %c0_i32_0 = arith.constant 0 : i32
    %c0_i32_1 = arith.constant 0 : i32
    return %c0_i32, %c0_i32_0 : i32, i32
  }
  func.func @transform_7(%arg0: i32) -> (i32, i32) {
    %c0_i32 = arith.constant 0 : i32
    %c0_i32_0 = arith.constant 0 : i32
    %c0_i32_1 = arith.constant 0 : i32
    return %c0_i32, %c0_i32_0 : i32, i32
  }
  func.func @transform_8(%arg0: i32) -> (i32, i32, i32) {
    %c0_i32 = arith.constant 0 : i32
    %c0_i32_0 = arith.constant 0 : i32
    %c0_i32_1 = arith.constant 0 : i32
    return %arg0, %c0_i32, %c0_i32_0 : i32, i32, i32
  }
  func.func @transform_9(%arg0: i32) -> (i32, i32, i32) {
    %c0_i32 = arith.constant 0 : i32
    %c0_i32_0 = arith.constant 0 : i32
    %c0_i32_1 = arith.constant 0 : i32
    return %arg0, %c0_i32, %c0_i32_0 : i32, i32, i32
  }
}

module attributes {stable_mosaic.version = 11 : i64} {
  func.func @_drconv_layer_kernel(%arg0: i32, %arg1: memref<1x4x256xbf16, #tpu.memory_space<vmem>>, %arg2: memref<1x4x256xf32, #tpu.memory_space<vmem>>, %arg3: memref<9x256xf32, #tpu.memory_space<vmem>>, %arg4: memref<1x8x36xbf16, #tpu.memory_space<vmem>>, %arg5: memref<2x36xf32, #tpu.memory_space<vmem>>, %arg6: memref<2x1xf32, #tpu.memory_space<vmem>>, %arg7: memref<4x1xf32, #tpu.memory_space<vmem>>, %arg8: memref<4x1xf32, #tpu.memory_space<vmem>>, %arg9: memref<1x4x256xf32, #tpu.memory_space<vmem>>, %arg10: memref<1x2x256xf32, #tpu.memory_space<vmem>>) attributes {dimension_semantics = [#tpu.dimension_semantics<parallel>], iteration_bounds = array<i64: 2>, scalar_prefetch = 0 : i64, scratch_operands = 0 : i64, tpu.core_type = #tpu.core_type<tc>, window_params = [{transform_indices = @transform_0, window_bounds = array<i64: 1, 4, 256>}, {transform_indices = @transform_1, window_bounds = array<i64: 1, 4, 256>}, {pipeline_mode = #tpu.pipeline_mode<synchronous>, transform_indices = @transform_2, window_bounds = array<i64: 9, 256>}, {transform_indices = @transform_3, window_bounds = array<i64: 1, 8, 36>}, {pipeline_mode = #tpu.pipeline_mode<synchronous>, transform_indices = @transform_4, window_bounds = array<i64: 2, 36>}, {pipeline_mode = #tpu.pipeline_mode<synchronous>, transform_indices = @transform_5, window_bounds = array<i64: 2, 1>}, {pipeline_mode = #tpu.pipeline_mode<synchronous>, transform_indices = @transform_6, window_bounds = array<i64: 4, 1>}, {pipeline_mode = #tpu.pipeline_mode<synchronous>, transform_indices = @transform_7, window_bounds = array<i64: 4, 1>}, {transform_indices = @transform_8, window_bounds = array<i64: 1, 4, 256>}, {transform_indices = @transform_9, window_bounds = array<i64: 1, 2, 256>}]} {
    %c0 = arith.constant 0 : index
    %c0_0 = arith.constant 0 : index
    %0 = vector.load %arg3[%c0, %c0_0] : memref<9x256xf32, #tpu.memory_space<vmem>>, vector<9x256xf32>
    %c0_1 = arith.constant 0 : index
    %c0_2 = arith.constant 0 : index
    %c0_3 = arith.constant 0 : index
    %1 = vector.load %arg2[%c0_1, %c0_2, %c0_3] : memref<1x4x256xf32, #tpu.memory_space<vmem>>, vector<1x4x256xf32>
    %2 = vector.shape_cast %1 : vector<1x4x256xf32> to vector<4x256xf32>
    %c17_i32 = arith.constant 17 : i32
    %3 = tpu.dynamic_rotate %2 by %c17_i32 dim 1 : vector<4x256xf32>, i32 -> vector<4x256xf32>
    %4 = vector.extract_strided_slice %0 {offsets = [0, 0], sizes = [1, 256], strides = [1, 1]} : vector<9x256xf32> to vector<1x256xf32>
    %5 = vector.broadcast %4 : vector<1x256xf32> to vector<4x256xf32>
    %6 = arith.mulf %3, %5 : vector<4x256xf32>
    %c16_i32 = arith.constant 16 : i32
    %7 = tpu.dynamic_rotate %2 by %c16_i32 dim 1 : vector<4x256xf32>, i32 -> vector<4x256xf32>
    %8 = vector.extract_strided_slice %0 {offsets = [1, 0], sizes = [1, 256], strides = [1, 1]} : vector<9x256xf32> to vector<1x256xf32>
    %9 = vector.broadcast %8 : vector<1x256xf32> to vector<4x256xf32>
    %10 = arith.mulf %7, %9 : vector<4x256xf32>
    %c15_i32 = arith.constant 15 : i32
    %11 = tpu.dynamic_rotate %2 by %c15_i32 dim 1 : vector<4x256xf32>, i32 -> vector<4x256xf32>
    %12 = vector.extract_strided_slice %0 {offsets = [2, 0], sizes = [1, 256], strides = [1, 1]} : vector<9x256xf32> to vector<1x256xf32>
    %13 = vector.broadcast %12 : vector<1x256xf32> to vector<4x256xf32>
    %14 = arith.mulf %11, %13 : vector<4x256xf32>
    %c1_i32 = arith.constant 1 : i32
    %15 = tpu.dynamic_rotate %2 by %c1_i32 dim 1 : vector<4x256xf32>, i32 -> vector<4x256xf32>
    %16 = vector.extract_strided_slice %0 {offsets = [3, 0], sizes = [1, 256], strides = [1, 1]} : vector<9x256xf32> to vector<1x256xf32>
    %17 = vector.broadcast %16 : vector<1x256xf32> to vector<4x256xf32>
    %18 = arith.mulf %15, %17 : vector<4x256xf32>
    %19 = vector.extract_strided_slice %0 {offsets = [4, 0], sizes = [1, 256], strides = [1, 1]} : vector<9x256xf32> to vector<1x256xf32>
    %20 = vector.broadcast %19 : vector<1x256xf32> to vector<4x256xf32>
    %21 = arith.mulf %2, %20 : vector<4x256xf32>
    %c255_i32 = arith.constant 255 : i32
    %22 = tpu.dynamic_rotate %2 by %c255_i32 dim 1 : vector<4x256xf32>, i32 -> vector<4x256xf32>
    %23 = vector.extract_strided_slice %0 {offsets = [5, 0], sizes = [1, 256], strides = [1, 1]} : vector<9x256xf32> to vector<1x256xf32>
    %24 = vector.broadcast %23 : vector<1x256xf32> to vector<4x256xf32>
    %25 = arith.mulf %22, %24 : vector<4x256xf32>
    %c241_i32 = arith.constant 241 : i32
    %26 = tpu.dynamic_rotate %2 by %c241_i32 dim 1 : vector<4x256xf32>, i32 -> vector<4x256xf32>
    %27 = vector.extract_strided_slice %0 {offsets = [6, 0], sizes = [1, 256], strides = [1, 1]} : vector<9x256xf32> to vector<1x256xf32>
    %28 = vector.broadcast %27 : vector<1x256xf32> to vector<4x256xf32>
    %29 = arith.mulf %26, %28 : vector<4x256xf32>
    %c240_i32 = arith.constant 240 : i32
    %30 = tpu.dynamic_rotate %2 by %c240_i32 dim 1 : vector<4x256xf32>, i32 -> vector<4x256xf32>
    %31 = vector.extract_strided_slice %0 {offsets = [7, 0], sizes = [1, 256], strides = [1, 1]} : vector<9x256xf32> to vector<1x256xf32>
    %32 = vector.broadcast %31 : vector<1x256xf32> to vector<4x256xf32>
    %33 = arith.mulf %30, %32 : vector<4x256xf32>
    %c239_i32 = arith.constant 239 : i32
    %34 = tpu.dynamic_rotate %2 by %c239_i32 dim 1 : vector<4x256xf32>, i32 -> vector<4x256xf32>
    %35 = vector.extract_strided_slice %0 {offsets = [8, 0], sizes = [1, 256], strides = [1, 1]} : vector<9x256xf32> to vector<1x256xf32>
    %36 = vector.broadcast %35 : vector<1x256xf32> to vector<4x256xf32>
    %37 = arith.mulf %34, %36 : vector<4x256xf32>
    %38 = tpu.concatenate %6, %10, %14, %18, %21, %25, %29, %33, %37 in 0 : vector<4x256xf32>, vector<4x256xf32>, vector<4x256xf32>, vector<4x256xf32>, vector<4x256xf32>, vector<4x256xf32>, vector<4x256xf32>, vector<4x256xf32>, vector<4x256xf32> -> vector<36x256xf32>
    %c0_4 = arith.constant 0 : index
    %c0_5 = arith.constant 0 : index
    %39 = vector.load %arg5[%c0_4, %c0_5] : memref<2x36xf32, #tpu.memory_space<vmem>>, vector<2x36xf32>
    %cst = arith.constant dense<0.000000e+00> : vector<2x256xf32>
    %40 = tpu.matmul %39, %38, %cst {dimension_numbers = #tpu.dot_dimension_numbers<[1], [0], [0], [1], [0, 0, 1, 1], [], []>} : vector<2x36xf32>, vector<36x256xf32>, vector<2x256xf32> -> vector<2x256xf32>
    %c0_6 = arith.constant 0 : index
    %c0_7 = arith.constant 0 : index
    %41 = vector.load %arg6[%c0_6, %c0_7] : memref<2x1xf32, #tpu.memory_space<vmem>>, vector<2x1xf32>
    %42 = vector.broadcast %41 : vector<2x1xf32> to vector<2x256xf32>
    %43 = arith.addf %40, %42 : vector<2x256xf32>
    %c0_8 = arith.constant 0 : index
    %c0_9 = arith.constant 0 : index
    %c0_10 = arith.constant 0 : index
    %44 = vector.load %arg10[%c0_8, %c0_9, %c0_10] : memref<1x2x256xf32, #tpu.memory_space<vmem>>, vector<1x2x256xf32>
    %45 = vector.shape_cast %44 : vector<1x2x256xf32> to vector<2x256xf32>
    %46 = vector.shape_cast %43 : vector<2x256xf32> to vector<1x2x256xf32>
    tpu.vector_store %arg10[%c0_8, %c0_9, %c0_10], %46 {strides = array<i32>} : memref<1x2x256xf32, #tpu.memory_space<vmem>>, vector<1x2x256xf32>,
    %c0_11 = arith.constant 0 : index
    %c0_12 = arith.constant 0 : index
    %c0_13 = arith.constant 0 : index
    %47 = vector.load %arg1[%c0_11, %c0_12, %c0_13] : memref<1x4x256xbf16, #tpu.memory_space<vmem>>, vector<1x4x256xbf16>
    %48 = vector.shape_cast %47 : vector<1x4x256xbf16> to vector<4x256xbf16>
    %49 = arith.extf %48 : vector<4x256xbf16> to vector<4x256xf32>
    %c17_i32_14 = arith.constant 17 : i32
    %50 = tpu.dynamic_rotate %49 by %c17_i32_14 dim 1 : vector<4x256xf32>, i32 -> vector<4x256xf32>
    %51 = vector.extract_strided_slice %0 {offsets = [0, 0], sizes = [1, 256], strides = [1, 1]} : vector<9x256xf32> to vector<1x256xf32>
    %52 = vector.broadcast %51 : vector<1x256xf32> to vector<4x256xf32>
    %53 = arith.mulf %50, %52 : vector<4x256xf32>
    %c16_i32_15 = arith.constant 16 : i32
    %54 = tpu.dynamic_rotate %49 by %c16_i32_15 dim 1 : vector<4x256xf32>, i32 -> vector<4x256xf32>
    %55 = vector.extract_strided_slice %0 {offsets = [1, 0], sizes = [1, 256], strides = [1, 1]} : vector<9x256xf32> to vector<1x256xf32>
    %56 = vector.broadcast %55 : vector<1x256xf32> to vector<4x256xf32>
    %57 = arith.mulf %54, %56 : vector<4x256xf32>
    %c15_i32_16 = arith.constant 15 : i32
    %58 = tpu.dynamic_rotate %49 by %c15_i32_16 dim 1 : vector<4x256xf32>, i32 -> vector<4x256xf32>
    %59 = vector.extract_strided_slice %0 {offsets = [2, 0], sizes = [1, 256], strides = [1, 1]} : vector<9x256xf32> to vector<1x256xf32>
    %60 = vector.broadcast %59 : vector<1x256xf32> to vector<4x256xf32>
    %61 = arith.mulf %58, %60 : vector<4x256xf32>
    %c1_i32_17 = arith.constant 1 : i32
    %62 = tpu.dynamic_rotate %49 by %c1_i32_17 dim 1 : vector<4x256xf32>, i32 -> vector<4x256xf32>
    %63 = vector.extract_strided_slice %0 {offsets = [3, 0], sizes = [1, 256], strides = [1, 1]} : vector<9x256xf32> to vector<1x256xf32>
    %64 = vector.broadcast %63 : vector<1x256xf32> to vector<4x256xf32>
    %65 = arith.mulf %62, %64 : vector<4x256xf32>
    %66 = vector.extract_strided_slice %0 {offsets = [4, 0], sizes = [1, 256], strides = [1, 1]} : vector<9x256xf32> to vector<1x256xf32>
    %67 = vector.broadcast %66 : vector<1x256xf32> to vector<4x256xf32>
    %68 = arith.mulf %49, %67 : vector<4x256xf32>
    %c255_i32_18 = arith.constant 255 : i32
    %69 = tpu.dynamic_rotate %49 by %c255_i32_18 dim 1 : vector<4x256xf32>, i32 -> vector<4x256xf32>
    %70 = vector.extract_strided_slice %0 {offsets = [5, 0], sizes = [1, 256], strides = [1, 1]} : vector<9x256xf32> to vector<1x256xf32>
    %71 = vector.broadcast %70 : vector<1x256xf32> to vector<4x256xf32>
    %72 = arith.mulf %69, %71 : vector<4x256xf32>
    %c241_i32_19 = arith.constant 241 : i32
    %73 = tpu.dynamic_rotate %49 by %c241_i32_19 dim 1 : vector<4x256xf32>, i32 -> vector<4x256xf32>
    %74 = vector.extract_strided_slice %0 {offsets = [6, 0], sizes = [1, 256], strides = [1, 1]} : vector<9x256xf32> to vector<1x256xf32>
    %75 = vector.broadcast %74 : vector<1x256xf32> to vector<4x256xf32>
    %76 = arith.mulf %73, %75 : vector<4x256xf32>
    %c240_i32_20 = arith.constant 240 : i32
    %77 = tpu.dynamic_rotate %49 by %c240_i32_20 dim 1 : vector<4x256xf32>, i32 -> vector<4x256xf32>
    %78 = vector.extract_strided_slice %0 {offsets = [7, 0], sizes = [1, 256], strides = [1, 1]} : vector<9x256xf32> to vector<1x256xf32>
    %79 = vector.broadcast %78 : vector<1x256xf32> to vector<4x256xf32>
    %80 = arith.mulf %77, %79 : vector<4x256xf32>
    %c239_i32_21 = arith.constant 239 : i32
    %81 = tpu.dynamic_rotate %49 by %c239_i32_21 dim 1 : vector<4x256xf32>, i32 -> vector<4x256xf32>
    %82 = vector.extract_strided_slice %0 {offsets = [8, 0], sizes = [1, 256], strides = [1, 1]} : vector<9x256xf32> to vector<1x256xf32>
    %83 = vector.broadcast %82 : vector<1x256xf32> to vector<4x256xf32>
    %84 = arith.mulf %81, %83 : vector<4x256xf32>
    %85 = tpu.concatenate %53, %57, %61, %65, %68, %72, %76, %80, %84 in 0 : vector<4x256xf32>, vector<4x256xf32>, vector<4x256xf32>, vector<4x256xf32>, vector<4x256xf32>, vector<4x256xf32>, vector<4x256xf32>, vector<4x256xf32>, vector<4x256xf32> -> vector<36x256xf32>
    %86 = arith.truncf %85 : vector<36x256xf32> to vector<36x256xbf16>
    %c0_22 = arith.constant 0 : index
    %c0_23 = arith.constant 0 : index
    %c0_24 = arith.constant 0 : index
    %87 = vector.load %arg4[%c0_22, %c0_23, %c0_24] : memref<1x8x36xbf16, #tpu.memory_space<vmem>>, vector<1x8x36xbf16>
    %88 = vector.shape_cast %87 : vector<1x8x36xbf16> to vector<8x36xbf16>
    %cst_25 = arith.constant dense<0.000000e+00> : vector<8x256xf32>
    %89 = tpu.matmul %88, %86, %cst_25 {dimension_numbers = #tpu.dot_dimension_numbers<[1], [0], [0], [1], [0, 0, 1, 1], [], []>} : vector<8x36xbf16>, vector<36x256xbf16>, vector<8x256xf32> -> vector<8x256xf32>
    %90 = vector.extract_strided_slice %43 {offsets = [0, 0], sizes = [1, 256], strides = [1, 1]} : vector<2x256xf32> to vector<1x256xf32>
    %c0_i32 = arith.constant 0 : i32
    %91 = vector.broadcast %c0_i32 : i32 to vector<1x256xi32>
    %92 = vector.extract_strided_slice %43 {offsets = [1, 0], sizes = [1, 256], strides = [1, 1]} : vector<2x256xf32> to vector<1x256xf32>
    %93 = arith.cmpf ogt, %92, %90 : vector<1x256xf32>
    %c1_i32_26 = arith.constant 1 : i32
    %94 = vector.broadcast %c1_i32_26 : i32 to vector<1x256xi32>
    %95 = arith.select %93, %94, %91 : vector<1x256xi1>, vector<1x256xi32>
    %cst_27 = arith.constant 0.000000e+00 : f32
    %96 = vector.broadcast %cst_27 : f32 to vector<4x256xf32>
    %c0_i32_28 = arith.constant 0 : i32
    %97 = vector.broadcast %c0_i32_28 : i32 to vector<1x256xi32>
    %98 = arith.cmpi eq, %95, %97 : vector<1x256xi32>
    %99 = arith.extui %98 : vector<1x256xi1> to vector<1x256xi32>
    %100 = arith.sitofp %99 : vector<1x256xi32> to vector<1x256xf32>
    %101 = vector.extract_strided_slice %89 {offsets = [0, 0], sizes = [4, 256], strides = [1, 1]} : vector<8x256xf32> to vector<4x256xf32>
    %102 = vector.broadcast %100 : vector<1x256xf32> to vector<4x256xf32>
    %103 = arith.mulf %102, %101 : vector<4x256xf32>
    %104 = arith.addf %96, %103 : vector<4x256xf32>
    %c1_i32_29 = arith.constant 1 : i32
    %105 = vector.broadcast %c1_i32_29 : i32 to vector<1x256xi32>
    %106 = arith.cmpi eq, %95, %105 : vector<1x256xi32>
    %107 = arith.extui %106 : vector<1x256xi1> to vector<1x256xi32>
    %108 = arith.sitofp %107 : vector<1x256xi32> to vector<1x256xf32>
    %109 = vector.extract_strided_slice %89 {offsets = [4, 0], sizes = [4, 256], strides = [1, 1]} : vector<8x256xf32> to vector<4x256xf32>
    %110 = vector.broadcast %108 : vector<1x256xf32> to vector<4x256xf32>
    %111 = arith.mulf %110, %109 : vector<4x256xf32>
    %112 = arith.addf %104, %111 : vector<4x256xf32>
    %c0_30 = arith.constant 0 : index
    %c0_31 = arith.constant 0 : index
    %113 = vector.load %arg7[%c0_30, %c0_31] : memref<4x1xf32, #tpu.memory_space<vmem>>, vector<4x1xf32>
    %114 = vector.broadcast %113 : vector<4x1xf32> to vector<4x256xf32>
    %115 = arith.mulf %112, %114 : vector<4x256xf32>
    %c0_32 = arith.constant 0 : index
    %c0_33 = arith.constant 0 : index
    %116 = vector.load %arg8[%c0_32, %c0_33] : memref<4x1xf32, #tpu.memory_space<vmem>>, vector<4x1xf32>
    %117 = vector.broadcast %116 : vector<4x1xf32> to vector<4x256xf32>
    %118 = arith.addf %115, %117 : vector<4x256xf32>
    %cst_34 = arith.constant 0.000000e+00 : f32
    %119 = vector.broadcast %cst_34 : f32 to vector<4x256xf32>
    %120 = arith.maximumf %118, %119 : vector<4x256xf32>
    %c0_35 = arith.constant 0 : index
    %c0_36 = arith.constant 0 : index
    %c0_37 = arith.constant 0 : index
    %121 = vector.load %arg9[%c0_35, %c0_36, %c0_37] : memref<1x4x256xf32, #tpu.memory_space<vmem>>, vector<1x4x256xf32>
    %122 = vector.shape_cast %121 : vector<1x4x256xf32> to vector<4x256xf32>
    %123 = vector.shape_cast %120 : vector<4x256xf32> to vector<1x4x256xf32>
    tpu.vector_store %arg9[%c0_35, %c0_36, %c0_37], %123 {strides = array<i32>} : memref<1x4x256xf32, #tpu.memory_space<vmem>>, vector<1x4x256xf32>,
    return
  }
  func.func @transform_0(%arg0: i32) -> (i32, i32, i32) {
    %c0_i32 = arith.constant 0 : i32
    %c0_i32_0 = arith.constant 0 : i32
    %c0_i32_1 = arith.constant 0 : i32
    return %arg0, %c0_i32, %c0_i32_0 : i32, i32, i32
  }
  func.func @transform_1(%arg0: i32) -> (i32, i32, i32) {
    %c0_i32 = arith.constant 0 : i32
    %c0_i32_0 = arith.constant 0 : i32
    %c0_i32_1 = arith.constant 0 : i32
    return %arg0, %c0_i32, %c0_i32_0 : i32, i32, i32
  }
  func.func @transform_2(%arg0: i32) -> (i32, i32) {
    %c0_i32 = arith.constant 0 : i32
    %c0_i32_0 = arith.constant 0 : i32
    %c0_i32_1 = arith.constant 0 : i32
    return %c0_i32, %c0_i32_0 : i32, i32
  }
  func.func @transform_3(%arg0: i32) -> (i32, i32, i32) {
    %c0_i32 = arith.constant 0 : i32
    %c0_i32_0 = arith.constant 0 : i32
    %c0_i32_1 = arith.constant 0 : i32
    return %arg0, %c0_i32, %c0_i32_0 : i32, i32, i32
  }
  func.func @transform_4(%arg0: i32) -> (i32, i32) {
    %c0_i32 = arith.constant 0 : i32
    %c0_i32_0 = arith.constant 0 : i32
    %c0_i32_1 = arith.constant 0 : i32
    return %c0_i32, %c0_i32_0 : i32, i32
  }
  func.func @transform_5(%arg0: i32) -> (i32, i32) {
    %c0_i32 = arith.constant 0 : i32
    %c0_i32_0 = arith.constant 0 : i32
    %c0_i32_1 = arith.constant 0 : i32
    return %c0_i32, %c0_i32_0 : i32, i32
  }
  func.func @transform_6(%arg0: i32) -> (i32, i32) {
    %c0_i32 = arith.constant 0 : i32
    %c0_i32_0 = arith.constant 0 : i32
    %c0_i32_1 = arith.constant 0 : i32
    return %c0_i32, %c0_i32_0 : i32, i32
  }
  func.func @transform_7(%arg0: i32) -> (i32, i32) {
    %c0_i32 = arith.constant 0 : i32
    %c0_i32_0 = arith.constant 0 : i32
    %c0_i32_1 = arith.constant 0 : i32
    return %c0_i32, %c0_i32_0 : i32, i32
  }
  func.func @transform_8(%arg0: i32) -> (i32, i32, i32) {
    %c0_i32 = arith.constant 0 : i32
    %c0_i32_0 = arith.constant 0 : i32
    %c0_i32_1 = arith.constant 0 : i32
    return %arg0, %c0_i32, %c0_i32_0 : i32, i32, i32
  }
  func.func @transform_9(%arg0: i32) -> (i32, i32, i32) {
    %c0_i32 = arith.constant 0 : i32
    %c0_i32_0 = arith.constant 0 : i32
    %c0_i32_1 = arith.constant 0 : i32
    return %arg0, %c0_i32, %c0_i32_0 : i32, i32, i32
  }
}

</mosaic_0001>

<bundles_post_ra>
// kernel: up_forward.2
= control target key start
LH: loop header
LB: loop body
LE: loop exit
PB: predicated region body
PF: predicated region fallthrough
CT: control target
= control target key end

     0   :  { %s1173_s30 = smov 0   ;;  %s1408_s0 = inlined_call_operand.vmem [shape: bf16[2,8,256], index: 0, kind: input, shape index: {}]   ;;  %s1409_s1 = inlined_call_operand.vmem [shape: f32[2,4,256], index: 1, kind: input, shape index: {}]   ;;  %s1410_s2 = inlined_call_operand.vmem [shape: f32[9,256], index: 2, kind: input, shape index: {}]   ;;  %s1411_s3 = inlined_call_operand.vmem [shape: bf16[2,8,72], index: 3, kind: input, shape index: {}]   ;;  %s1412_s4 = inlined_call_operand.vmem [shape: f32[2,36], index: 4, kind: input, shape index: {}]   ;;  %s1413_s5 = inlined_call_operand.vmem [shape: f32[2,1], index: 5, kind: input, shape index: {}]   ;;  %s1414_s6 = inlined_call_operand.vmem [shape: f32[4,1], index: 6, kind: input, shape index: {}]   ;;  %s1415_s7 = inlined_call_operand.vmem [shape: f32[4,1], index: 7, kind: input, shape index: {}]   ;;  %s1416_s8 = inlined_call_operand.vmem [shape: bf16[2,4,256], index: 8, kind: output, shape index: {0}]   ;;  %s1417_s9 = inlined_call_operand.vmem [shape: f32[2,2,256], index: 9, kind: output, shape index: {1}]  }
   0x1 LB: > { %s1004_s10 = sadd.s32 4294967295, %s1110_s30   ;;  %p1008_p0 = scmp.ge.s32.totalorder %s1110_s30, 1  ;;  %s1110_s30 = sphi %s1173_s30, %s20_s30  }
   0x2   : > { %p309_p1 = scmp.lt.s32.totalorder %s1110_s30, 3 }
   0x4   : > { %p310_p2 = pnand %p1008_p0, %p309_p1 }
   0x5   : > { %p359_p3 = scmp.lt.s32.totalorder (!%p310_p2), %s1004_s10, 1  ;;  %s1112_s18 = smov (!%p310_p2), 111  }
   0x6   : > { %313 = sbr.rel (%p310_p2) target bundleno = 396 (0x18c), region = 52  ;;  %s1113_s19 = smov (!%p310_p2), 112  }
   0x7   : > { %s1114_s20 = smov (!%p310_p2), 113   ;;  %s1115_s21 = smov (!%p310_p2), 127  }
   0x8   : > { %s1116_s22 = smov (!%p310_p2), 1   ;;  %s1117_s23 = smov (!%p310_p2), 16  }
   0x9   : > { %s1119_s24 = smov (!%p310_p2), 15   ;;  %s1120_s25 = smov (!%p310_p2), 17  }
   0xb   : > { %s1419_s10 = smov (!%p359_p3, %s1004_s10), 1  ;;  %v1118_v6 = vmov 0.0   ;;  %v1121_v7 = vmov 0   ;;  %v580_v8 = vld [vmem:[%s1413_s5] sm:$0x3]  ;;  %v396_v11 = vlaneseq  ;;  %vm570_vm1 = vcmask 1043456  }
   0xc   : > { %s1038_s11 = sshll.u32 %s1419_s10, 3  ;;  %660 = vmatprep.mubr.f32.mxu0 %v1118_v6  ;;  %801 = vmatprep.mubr.bf16.mxu1 %v1121_v7  ;;  %v860_v9 = vld [vmem:[%s1414_s6] sm:$0xf]  ;;  %v1018_v21 = vld [vmem:[%s1410_s2 + $0x10] ss:$0 sm:$0xff]  ;;  %v1242_v25 = vld [vmem:[%s1410_s2 + $0x8] sm:$0xff] }
   0xd   : > { %s368_s14 = scalar_lea.vmem %s1409_s1, %s1038_s11  ;;  %s363_s17 = scalar_lea.vmem %s1408_s0, %s1038_s11  ;;  %1101 = vset.pattern.permute.xlu0 %v1121_v7  ;;  %1102 = vset.pattern.permute.xlu1 %v1121_v7  ;;  %v868_v10 = vld [vmem:[%s1415_s7] sm:$0xf]  ;;  %v1220_v14 = vand.u32 127, %v396_v11  ;;  %v1222_v15 = vshrl.u32 %v396_v11, 7  ;;  %v1019_v22 = vld [vmem:[%s1410_s2 + $0x18] ss:$0 sm:$0xff] }
   0xe   : > { %v1190_v0 = vld [vmem:[%s368_s14] sm:$0xff]  ;;  %vm586_vm9 = vcmask 293888   ;;  %vm759_vm10 = vcmask 588800  }
   0xf   : > { %v1192_v1 = vld [vmem:[%s363_s17] sm:$0xff]  ;;  %526 = vrot.lane.b32.xlu1 %v1190_v0, %s1112_s18  ;;  %509 = vrot.lane.b32.xlu0 %v1190_v0, %s1113_s19  ;;  %v390_v4 = vcombine.high %v1190_v0, %v1190_v0  ;;  %vm530_vm0 = vcmp.lt.s32.totalorder %v1220_v14, 111  ;;  %v464_v18 = vsub.s32 4, %v1222_v15  ;;  %v518_v23 = vsub.s32 7, %v1222_v15 }
  0x10   : > { %v680_v2 = vunpack.c.l.bf16 %v1192_v1  ;;  %v681_v3 = vunpack.c.h.bf16 %v1192_v1  ;;  %vm496_vm2 = vcmp.lt.s32.totalorder %v1220_v14, 113  ;;  %v1237_v24 = vld [vmem:[%s1410_s2] sm:$0xff]  ;;  %v484_v28 = vsub.s32 5, %v1222_v15 }
  0x11   : > { %v501_v29 = vsub.s32 6, %v1222_v15  ;;  %v1251_v34 = vrot.slane %v1237_v24, %v464_v18  ;;  %v1254_v35 = vrot.slane %v1242_v25, %v464_v18  ;;  %vm513_vm3 = vcmp.lt.s32.totalorder %v1220_v14, 112 }
  0x12   : > { %v1061_v5 = vpack.i.bf16 %v681_v3, %v680_v2  ;;  %v519_v44 = vrot.slane %v1237_v24, %v518_v23  ;;  %v523_v55 = vrot.slane %v1242_v25, %v518_v23  ;;  %vm479_vm4 = vcmp.lt.s32.totalorder %v1220_v14, 127 }
  0x13   : > { %511 = vrot.lane.b32.xlu1 %v390_v4, %s1113_s19  ;;  %v502_v48 = vrot.slane %v1237_v24, %v501_v29  ;;  %v506_v49 = vrot.slane %v1242_v25, %v501_v29  ;;  %v472_v50 = vcombine.low %v1251_v34, %v1254_v35  ;;  %v489_v57 = vrot.slane %v1242_v25, %v484_v28 }
  0x14   : > { %1062 = vrot.lane.b32.xlu0 %v1061_v5, %s1112_s18  ;;  %v485_v61 = vrot.slane %v1237_v24, %v484_v28  ;;  %vm449_vm5 = vcmp.lt.s32.totalorder %v1220_v14, 1  ;;  %vm415_vm6 = vcmp.lt.s32.totalorder %v1220_v14, 16  ;;  %vm432_vm7 = vcmp.lt.s32.totalorder %v1220_v14, 15 }
  0x15   : > { %vm398_vm8 = vcmp.lt.s32.totalorder %v1220_v14, 17 }
  0x17   : > { %1067 = vrot.lane.b32.xlu1 %v1061_v5, %s1114_s20 }
  0x18   : > { %528 = vrot.lane.b32.xlu0 %v390_v4, %s1112_s18 }
  0x1b   : > { %475 = vrot.lane.b32.xlu1 %v1190_v0, %s1115_s21 }
  0x1c   : > { %1072 = vrot.lane.b32.xlu0 %v1061_v5, %s1113_s19 }
  0x1f   : > { %492 = vrot.lane.b32.xlu1 %v1190_v0, %s1114_s20 }
  0x20   : > { %477 = vrot.lane.b32.xlu0 %v390_v4, %s1115_s21 }
  0x23   : > { %445 = vrot.lane.b32.xlu1 %v1190_v0, %s1116_s22 }
  0x24   : > { %494 = vrot.lane.b32.xlu0 %v390_v4, %s1114_s20 }
  0x27   : > { %1077 = vrot.lane.b32.xlu1 %v1061_v5, %s1115_s21 }
  0x28   : > { %447 = vrot.lane.b32.xlu0 %v390_v4, %s1116_s22 }
  0x2b   : > { %413 = vrot.lane.b32.xlu1 %v390_v4, %s1117_s23 }
  0x2c   : > { %411 = vrot.lane.b32.xlu0 %v1190_v0, %s1117_s23 }
  0x2f   : > { %430 = vrot.lane.b32.xlu1 %v390_v4, %s1119_s24 }
  0x30   : > { %428 = vrot.lane.b32.xlu0 %v1190_v0, %s1119_s24 }
  0x33   : > { %394 = vrot.lane.b32.xlu1 %v390_v4, %s1120_s25 }
  0x34   : > { %392 = vrot.lane.b32.xlu0 %v1190_v0, %s1120_s25 }
  0x37   : > { %1087 = vrot.lane.b32.xlu1 %v1061_v5, %s1116_s22 }
  0x38   : > { %1082 = vrot.lane.b32.xlu0 %v1061_v5, %s1119_s24 }
  0x3b   : > { %1097 = vrot.lane.b32.xlu1 %v1061_v5, %s1117_s23  ;;  %s1383_s23 = sshll.u32 %s1419_s10, 2 }
  0x3c   : > { %1092 = vrot.lane.b32.xlu0 %v1061_v5, %s1120_s25  ;;  %s372_s26 = scalar_lea.vmem %s1411_s3, %s1383_s23  ;;  %s382_s28 = scalar_lea.vmem %s1417_s9, %s1383_s23 }
  0x3d   : > { %v758_v14 = vld [vmem:[%s372_s26] sm:$0xf]  ;;  %s377_s12 = scalar_lea.vmem %s1416_s8, %s1383_s23 }
  0x3f   : > { %863 = vperm.xlu1 %1102, %v860_v9  }
  0x40   : > { %583 = vperm.xlu0 %1101, %v580_v8  }
  0x43   : > { %871 = vperm.xlu1 %1102, %v868_v10  }
  0x81   : > { %v527_v12 = vpop.permute.xlu1 %526  ;;  %v510_v13 = vpop.permute.xlu0 %509 }
  0x85   : > { %v512_v16 = vpop.permute.xlu1 %511 }
  0x86   : > { %v1063_v17 = vpop.permute.xlu0 %1062  ;;  %v514_v56 = vsel %vm513_vm3, %v510_v13, %v512_v16  ;;  %v515_v58 = vsel %vm513_vm3, %v512_v16, %v510_v13 }
  0x87   : > { %v1065_v19 = vunpack.i.h.bf16 %v1063_v17  ;;  %v1064_v20 = vunpack.i.l.bf16 %v1063_v17  ;;  %v524_v9 = vmul.f32 %v519_v44, %v514_v56  ;;  %v525_v13 = vmul.f32 %v523_v55, %v515_v58 }
  0x89   : > { %v745_v26 = vsel %vm530_vm0, %v1065_v19, %v1064_v20  ;;  %v744_v27 = vsel %vm530_vm0, %v1064_v20, %v1065_v19  ;;  %v1068_v30 = vpop.permute.xlu1 %1067  ;;  %v454_v20 = vsub.s32 3, %v1222_v15  ;;  %v566_v23 = vrot.slane %v524_v9, 4 }
  0x8a   : > { %v529_v31 = vpop.permute.xlu0 %528  ;;  %v747_v32 = vmul.f32 %v1019_v22, %v745_v26  ;;  %v746_v33 = vmul.f32 %v1018_v21, %v744_v27  ;;  %v1070_v36 = vunpack.i.h.bf16 %v1068_v30  ;;  %v1069_v37 = vunpack.i.l.bf16 %v1068_v30 }
  0x8b   : > { %v531_v38 = vsel %vm530_vm0, %v527_v12, %v529_v31  ;;  %v532_v39 = vsel %vm530_vm0, %v529_v31, %v527_v12  ;;  %v474_v12 = vmul.f32 %v472_v50, %v1190_v0  ;;  %v567_v0 = vrot.slane %v525_v13, 4 }
  0x8c   : > { %v541_v40 = vmul.f32 %v1018_v21, %v531_v38  ;;  %v542_v41 = vmul.f32 %v1019_v22, %v532_v39  ;;  %v757_v42 = vpack.c.bf16 %v747_v32, %v747_v32  ;;  %v756_v43 = vpack.c.bf16 %v746_v33, %v746_v33 }
  0x8d   : > { %v476_v45 = vpop.permute.xlu1 %475  ;;  %v729_v53 = vsel %vm496_vm2, %v1070_v36, %v1069_v37  ;;  %v728_v54 = vsel %vm496_vm2, %v1069_v37, %v1070_v36  ;;  %v556_v28 = vcombine.high %v474_v12, %v474_v12  ;;  %v1298_v33 = vrot.slane %v1237_v24, %v454_v20 }
  0x8e   : > { %1020 = vmatprep.subr.msk.mxu0 %vm570_vm1, %v542_v41  ;;  %v1073_v46 = vpop.permute.xlu0 %1072  ;;  %1024 = vmatprep.subr.msk.bf16.mxu1 %vm570_vm1, %v757_v42  ;;  %v764_v47 = vsel %vm570_vm1, %v756_v43, 0  ;;  %v731_v4 = vmul.f32 %v729_v53, %v506_v49  ;;  %v730_v7 = vmul.f32 %v728_v54, %v502_v48  ;;  %v1301_v37 = vrot.slane %v1242_v25, %v454_v20 }
  0x8f   : > { %v1075_v51 = vunpack.i.h.bf16 %v1073_v46  ;;  %v1074_v52 = vunpack.i.l.bf16 %v1073_v46  ;;  %1021 = vmatpush1.msk.msra.mxu0 %vm570_vm1, %v541_v40  ;;  %776 = vmatpush1.bf16.msra.mxu1 %v764_v47  ;;  %v1306_v41 = vsub.s32 1, %v1222_v15  ;;  %v403_v53 = vsub.s32 0, %v1222_v15 }
  0x91   : > { %v736_v59 = vsel %vm513_vm3, %v1074_v52, %v1075_v51  ;;  %v737_v60 = vsel %vm513_vm3, %v1075_v51, %v1074_v52  ;;  %v493_v62 = vpop.permute.xlu1 %492  ;;  %v1335_v56 = vrot.slane %v1242_v25, %v1306_v41 }
  0x92   : > { %v478_v63 = vpop.permute.xlu0 %477  ;;  %v739_v5 = vmul.f32 %v737_v60, %v523_v55  ;;  %v738_v8 = vmul.f32 %v736_v59, %v519_v44  ;;  %v715_v44 = vmul.f32 %v681_v3, %v1254_v35 }
  0x93   : > { %v480_v10 = vsel %vm479_vm4, %v476_v45, %v478_v63  ;;  %v481_v11 = vsel %vm479_vm4, %v478_v63, %v476_v45  ;;  %v714_v45 = vmul.f32 %v680_v2, %v1251_v34  ;;  %v1328_v34 = vrot.slane %v1237_v24, %v1306_v41 }
  0x94   : > { %v491_v16 = vmul.f32 %v489_v57, %v481_v11  ;;  %v755_v17 = vpack.c.bf16 %v739_v5, %v731_v4  ;;  %v754_v18 = vpack.c.bf16 %v738_v8, %v730_v7  ;;  %v490_v19 = vmul.f32 %v485_v61, %v480_v10 }
  0x95   : > { %v446_v21 = vpop.permute.xlu1 %445  ;;  %v404_v4 = vrot.slane %v1237_v24, %v403_v53  ;;  %v408_v5 = vrot.slane %v1242_v25, %v403_v53 }
  0x96   : > { %v495_v22 = vpop.permute.xlu0 %494  ;;  %777 = vmatprep.subr.bf16.mxu1 %v755_v17  ;;  %v561_v29 = vrot.slane %v491_v16, 4  ;;  %v560_v32 = vrot.slane %v490_v19, 4 }
  0x97   : > { %v497_v26 = vsel %vm496_vm2, %v493_v62, %v495_v22  ;;  %v498_v27 = vsel %vm496_vm2, %v495_v22, %v493_v62  ;;  %778 = vmatpush1.bf16.msra.mxu1 %v754_v18 }
  0x98   : > { %v507_v30 = vmul.f32 %v502_v48, %v497_v26  ;;  %v508_v31 = vmul.f32 %v506_v49, %v498_v27  ;;  %v576_v48 = vsel %vm570_vm1, %v556_v28, %v561_v29  ;;  %v437_v49 = vsub.s32 2, %v1222_v15 }
  0x99   : > { %v1078_v36 = vpop.permute.xlu1 %1077  ;;  %v575_v1 = vsel %vm570_vm1, %v474_v12, %v560_v32 }
  0x9a   : > { %v448_v38 = vpop.permute.xlu0 %447  ;;  %v578_v39 = vsel %vm570_vm1, %v508_v31, %v567_v0  ;;  %v577_v40 = vsel %vm570_vm1, %v507_v30, %v566_v23  ;;  %v1080_v42 = vunpack.i.h.bf16 %v1078_v36  ;;  %v1079_v43 = vunpack.i.l.bf16 %v1078_v36  ;;  %v579_v30 = vld [vmem:[%s1412_s4] sm:$0x3] }
  0x9b   : > { %620 = vmatprep.subr.mxu0 %v578_v39  ;;  %v450_v46 = vsel %vm449_vm5, %v446_v21, %v448_v38  ;;  %v451_v47 = vsel %vm449_vm5, %v448_v38, %v446_v21  ;;  %v438_v58 = vrot.slane %v1237_v24, %v437_v49  ;;  %v442_v59 = vrot.slane %v1242_v25, %v437_v49 }
  0x9c   : > { %621 = vmatpush1.msra.mxu0 %v577_v40  ;;  %v720_v50 = vsel %vm479_vm4, %v1079_v43, %v1080_v42  ;;  %v721_v3 = vsel %vm479_vm4, %v1080_v42, %v1079_v43  ;;  %v460_v54 = vmul.f32 %v1298_v33, %v451_v47  ;;  %v461_v55 = vmul.f32 %v1301_v37, %v450_v46 }
  0x9d   : > { %622 = vmatprep.subr.mxu0 %v576_v48  ;;  %v414_v2 = vpop.permute.xlu1 %413  ;;  %v723_v51 = vmul.f32 %v721_v3, %v489_v57  ;;  %v722_v52 = vmul.f32 %v720_v50, %v485_v61 }
  0x9e   : > { %623 = vmatpush1.msra.mxu0 %v575_v1  ;;  %v412_v35 = vpop.permute.xlu0 %411  ;;  %v551_v7 = vrot.slane %v460_v54, 4  ;;  %v552_v8 = vrot.slane %v461_v55, 4 }
  0x9f   : > { %v753_v60 = vpack.c.bf16 %v723_v51, %v715_v44  ;;  %v752_v62 = vpack.c.bf16 %v722_v52, %v714_v45  ;;  %v416_v57 = vsel %vm415_vm6, %v412_v35, %v414_v2  ;;  %v417_v15 = vsel %vm415_vm6, %v414_v2, %v412_v35 }
  0xa0   : > { %v426_v11 = vmul.f32 %v1328_v34, %v417_v15  ;;  %v427_v12 = vmul.f32 %v1335_v56, %v416_v57 }
  0xa1   : > { %v431_v61 = vpop.permute.xlu1 %430  ;;  %779 = vmatprep.subr.bf16.mxu1 %v753_v60 }
  0xa2   : > { %v429_v63 = vpop.permute.xlu0 %428  ;;  %780 = vmatpush1.bf16.msra.mxu1 %v752_v62  ;;  %v545_v21 = vrot.slane %v426_v11, 4  ;;  %v546_v22 = vrot.slane %v427_v12, 4 }
  0xa3   : > { %v433_v9 = vsel %vm432_vm7, %v429_v63, %v431_v61  ;;  %v434_v10 = vsel %vm432_vm7, %v431_v61, %v429_v63 }
  0xa4   : > { %v443_v13 = vmul.f32 %v438_v58, %v434_v10  ;;  %v444_v16 = vmul.f32 %v442_v59, %v433_v9 }
  0xa5   : > { %v395_v17 = vpop.permute.xlu1 %394 }
  0xa6   : > { %v393_v18 = vpop.permute.xlu0 %392  ;;  %v574_v24 = vsel %vm570_vm1, %v444_v16, %v552_v8  ;;  %v573_v25 = vsel %vm570_vm1, %v443_v13, %v551_v7  ;;  %v1122_v8 = vmov 1.0  }
  0xa7   : > { %v399_v19 = vsel %vm398_vm8, %v393_v18, %v395_v17  ;;  %v400_v20 = vsel %vm398_vm8, %v395_v17, %v393_v18  ;;  %624 = vmatprep.subr.mxu0 %v574_v24 }
  0xa8   : > { %v409_v23 = vmul.f32 %v404_v4, %v400_v20  ;;  %v410_v26 = vmul.f32 %v408_v5, %v399_v19  ;;  %625 = vmatpush1.msra.mxu0 %v573_v25 }
  0xa9   : > { %v1088_v27 = vpop.permute.xlu1 %1087 }
  0xaa   : > { %v1083_v28 = vpop.permute.xlu0 %1082  ;;  %v572_v0 = vsel %vm570_vm1, %v410_v26, %v546_v22  ;;  %v571_v29 = vsel %vm570_vm1, %v409_v23, %v545_v21  ;;  %v1090_v31 = vunpack.i.h.bf16 %v1088_v27  ;;  %v1089_v32 = vunpack.i.l.bf16 %v1088_v27 }
  0xab   : > { %v1085_v36 = vunpack.i.h.bf16 %v1083_v28  ;;  %v1084_v38 = vunpack.i.l.bf16 %v1083_v28  ;;  %626 = vmatprep.subr.mxu0 %v572_v0 }
  0xac   : > { %627 = vmatpush1.msra.mxu0 %v571_v29  ;;  %v710_v39 = vsel %vm449_vm5, %v1089_v32, %v1090_v31  ;;  %v711_v40 = vsel %vm449_vm5, %v1090_v31, %v1089_v32 }
  0xad   : > { %v702_v42 = vsel %vm432_vm7, %v1084_v38, %v1085_v36  ;;  %v703_v43 = vsel %vm432_vm7, %v1085_v36, %v1084_v38  ;;  %1022 = vmatmul.mubr.msk.f32.vlgmr.msra.gmra.mxu0 %vm586_vm9, %v579_v30  ;;  %v1098_v44 = vpop.permute.xlu1 %1097  ;;  %v713_v47 = vmul.f32 %v710_v39, %v1301_v37  ;;  %v712_v49 = vmul.f32 %v711_v40, %v1298_v33 }
  0xae   : > { %v1093_v45 = vpop.permute.xlu0 %1092  ;;  %v705_v46 = vmul.f32 %v702_v42, %v442_v59  ;;  %v704_v48 = vmul.f32 %v703_v43, %v438_v58  ;;  %v1100_v50 = vunpack.i.h.bf16 %v1098_v44  ;;  %v1099_v3 = vunpack.i.l.bf16 %v1098_v44 }
  0xaf   : > { %v1095_v1 = vunpack.i.h.bf16 %v1093_v45  ;;  %v1094_v2 = vunpack.i.l.bf16 %v1093_v45 }
  0xb0   : > { %v751_v35 = vpack.c.bf16 %v713_v47, %v705_v46  ;;  %v750_v51 = vpack.c.bf16 %v712_v49, %v704_v48  ;;  %v694_v52 = vsel %vm415_vm6, %v1099_v3, %v1100_v50  ;;  %v695_v53 = vsel %vm415_vm6, %v1100_v50, %v1099_v3 }
  0xb1   : > { %v686_v54 = vsel %vm398_vm8, %v1094_v2, %v1095_v1  ;;  %v687_v37 = vsel %vm398_vm8, %v1095_v1, %v1094_v2  ;;  %v697_v55 = vmul.f32 %v694_v52, %v1335_v56  ;;  %v696_v59 = vmul.f32 %v695_v53, %v1328_v34 }
  0xb2   : > { %781 = vmatprep.subr.bf16.mxu1 %v751_v35  ;;  %v689_v33 = vmul.f32 %v686_v54, %v408_v5  ;;  %v688_v58 = vmul.f32 %v687_v37, %v404_v4 }
  0xb3   : > { %782 = vmatpush1.bf16.msra.mxu1 %v750_v51 }
  0xb4   : > { %v749_v60 = vpack.c.bf16 %v697_v55, %v689_v33  ;;  %v748_v62 = vpack.c.bf16 %v696_v59, %v688_v58 }
  0xb6   : > { %783 = vmatprep.subr.bf16.mxu1 %v749_v60 }
  0xb7   : > { %784 = vmatpush1.bf16.msra.mxu1 %v748_v62 }
  0xba   : > { %1025 = vmatmul.mubr.msk.bf16.vlgmr.msra.gmra.mxu1 %vm759_vm10, %v758_v14  ;;  %v864_v24 = vpop.permute.xlu1 %863 }
  0xbb   : > { %v584_v57 = vpop.permute.xlu0 %583 }
  0xbe   : > { %v872_v30 = vpop.permute.xlu1 %871 }
 0x16d   : > { %v662_v15 = vpop.f32.mrf.mxu0 }
 0x16e   : > { %v663_v61 = vadd.f32 %v662_v15, %v584_v57 }
 0x16f   : > { %v664_v56 = vpop.f32.mrf.mxu0 }
 0x170   : > { %v665_v63 = vadd.f32 %v664_v56, %v584_v57  ;;  %v810_v4 = vrot.slane %v663_v61, 7 }
 0x172   : > { %v669_v34 = vcombine.low %v663_v61, %v665_v63  ;;  %v811_v5 = vrot.slane %v665_v63, 7  ;;  %vm814_vm11 = vcmp.gt.f32.partialorder %v663_v61, %v810_v4 }
 0x173   : > { %v1032_v7 = vsel %vm814_vm11, 1.0, %v1118_v6  ;;  %v1030_v9 = vsel %vm814_vm11, 0.0, %v1122_v8 }
 0x174   : > { %1023 = vst.sshfl [vmem:[%s382_s28] sm:$0x33 pattern:$0x76325410] %v669_v34  ;;  %vm815_vm12 = vcmp.gt.f32.partialorder %v665_v63, %v811_v5  ;;  %v845_v11 = vrot.slane %v1032_v7, %v1306_v41  ;;  %v827_v16 = vrot.slane %v1030_v9, %v1306_v41 }
 0x175   : > { %v1033_v10 = vsel %vm815_vm12, 1.0, %v1118_v6  ;;  %v1031_v13 = vsel %vm815_vm12, 0.0, %v1122_v8 }
 0x176   : > { %v849_v18 = vrot.slane %v1033_v10, %v1306_v41  ;;  %v831_v21 = vrot.slane %v1031_v13, %v1306_v41 }
 0x17a   : > { %v803_v12 = vpop.f32.mrf.mxu1 }
 0x17b   : > { %v850_v17 = vmul.f32 %v845_v11, %v803_v12  ;;  %v832_v19 = vmul.f32 %v827_v16, %v803_v12 }
 0x17c   : > { %v805_v25 = vpop.f32.mrf.mxu1 }
 0x17d   : > { %v854_v20 = vrot.slane %v850_v17, 4  ;;  %v851_v22 = vmul.f32 %v849_v18, %v805_v25  ;;  %v833_v6 = vmul.f32 %v831_v21, %v805_v25 }
 0x17e   : > { %v807_v23 = vpop.f32.mrf.mxu1 }
 0x17f   : > { %v858_v26 = vadd.f32 %v854_v20, %v832_v19  ;;  %v855_v27 = vrot.slane %v851_v22, 4 }
 0x180   : > { %v808_v28 = vpop.f32.mrf.mxu1 }
 0x181   : > { %v866_v0 = vmul.f32 %v864_v24, %v858_v26  ;;  %v859_v29 = vadd.f32 %v855_v27, %v833_v6 }
 0x183   : > { %v867_v31 = vmul.f32 %v864_v24, %v859_v29  ;;  %v874_v32 = vadd.f32 %v872_v30, %v866_v0 }
 0x185   : > { %v875_v36 = vadd.f32 %v872_v30, %v867_v31  ;;  %v876_v38 = vmax.f32 %v874_v32, 0.0 }
 0x187   : > { %v877_v39 = vmax.f32 %v875_v36, 0.0 }
 0x189   : > { %v1034_v40 = vpack.c.bf16 %v877_v39, %v876_v38 }
 0x18b   : > { %1035 = vst.sshfl [vmem:[%s377_s12] sm:$0x33 pattern:$0x76325410] %v1034_v40 }
 0x18c PF: > { %s20_s30 = sadd.s32 1, %s1110_s30  }
 0x18d   : > { %p17_p4 = scmp.ge.s32.totalorder %s20_s30, 4  }
 0x18f   :  { %19 = sbr.rel (!%p17_p4) target bundleno = 1 (0x1), region = 100 }

// kernel: up_forward.3
= control target key start
LH: loop header
LB: loop body
LE: loop exit
PB: predicated region body
PF: predicated region fallthrough
CT: control target
= control target key end

     0   :  { %s1194_s30 = smov 0   ;;  %s1482_s0 = inlined_call_operand.vmem [shape: bf16[2,4,256], index: 0, kind: input, shape index: {}]   ;;  %s1483_s1 = inlined_call_operand.vmem [shape: f32[2,4,256], index: 1, kind: input, shape index: {}]   ;;  %s1484_s2 = inlined_call_operand.vmem [shape: f32[9,256], index: 2, kind: input, shape index: {}]   ;;  %s1485_s3 = inlined_call_operand.vmem [shape: bf16[2,8,36], index: 3, kind: input, shape index: {}]   ;;  %s1486_s4 = inlined_call_operand.vmem [shape: f32[2,36], index: 4, kind: input, shape index: {}]   ;;  %s1487_s5 = inlined_call_operand.vmem [shape: f32[2,1], index: 5, kind: input, shape index: {}]   ;;  %s1488_s6 = inlined_call_operand.vmem [shape: f32[4,1], index: 6, kind: input, shape index: {}]   ;;  %s1489_s7 = inlined_call_operand.vmem [shape: f32[4,1], index: 7, kind: input, shape index: {}]   ;;  %s1490_s8 = inlined_call_operand.vmem [shape: f32[2,4,256], index: 8, kind: output, shape index: {0}]   ;;  %s1491_s9 = inlined_call_operand.vmem [shape: f32[2,2,256], index: 9, kind: output, shape index: {1}]  }
   0x1 LB: > { %s1027_s10 = sadd.s32 4294967295, %s1131_s30   ;;  %p1031_p0 = scmp.ge.s32.totalorder %s1131_s30, 1  ;;  %s1131_s30 = sphi %s1194_s30, %s20_s30  }
   0x2   : > { %p309_p1 = scmp.lt.s32.totalorder %s1131_s30, 3 }
   0x4   : > { %p310_p2 = pnand %p1031_p0, %p309_p1 }
   0x5   : > { %p359_p3 = scmp.lt.s32.totalorder (!%p310_p2), %s1027_s10, 1  ;;  %s1133_s16 = smov (!%p310_p2), 111  }
   0x6   : > { %313 = sbr.rel (%p310_p2) target bundleno = 398 (0x18e), region = 52  ;;  %s1134_s17 = smov (!%p310_p2), 112  }
   0x7   : > { %s1135_s21 = smov (!%p310_p2), 127   ;;  %s1136_s22 = smov (!%p310_p2), 113  }
   0x8   : > { %s1137_s23 = smov (!%p310_p2), 1   ;;  %s1138_s24 = smov (!%p310_p2), 16  }
   0x9   : > { %s1139_s25 = smov (!%p310_p2), 15   ;;  %s1141_s26 = smov (!%p310_p2), 17  }
   0xb   : > { %s1493_s10 = smov (!%p359_p3, %s1027_s10), 1  ;;  %v1140_v6 = vmov 0.0   ;;  %v1142_v7 = vmov 0   ;;  %v580_v8 = vld [vmem:[%s1487_s5] sm:$0x3]  ;;  %v396_v11 = vlaneseq  ;;  %v1258_v15 = vld [vmem:[%s1484_s2 + $0x8] sm:$0xff] }
   0xc   : > { %s1060_s11 = sshll.u32 %s1493_s10, 3  ;;  %s1213_s15 = sshll.u32 %s1493_s10, 2  ;;  %660 = vmatprep.mubr.f32.mxu0 %v1140_v6  ;;  %833 = vmatprep.mubr.bf16.mxu1 %v1142_v7  ;;  %v892_v9 = vld [vmem:[%s1488_s6] sm:$0xf]  ;;  %v1270_v23 = vld [vmem:[%s1484_s2 + $0x10] ss:$0 sm:$0xff] }
   0xd   : > { %s368_s14 = scalar_lea.vmem %s1483_s1, %s1060_s11  ;;  %s363_s20 = scalar_lea.vmem %s1482_s0, %s1213_s15  ;;  %1122 = vset.pattern.permute.xlu0 %v1142_v7  ;;  %1123 = vset.pattern.permute.xlu1 %v1142_v7  ;;  %v900_v10 = vld [vmem:[%s1489_s7] sm:$0xf]  ;;  %v1247_v12 = vshrl.u32 %v396_v11, 7  ;;  %v1260_v16 = vand.u32 127, %v396_v11  ;;  %v1275_v24 = vld [vmem:[%s1484_s2 + $0x18] ss:$0 sm:$0xff] }
   0xe   : > { %v1210_v0 = vld [vmem:[%s368_s14] sm:$0xff]  ;;  %vm570_vm1 = vcmask 1043456   ;;  %vm794_vm8 = vcmask 1041408   ;;  %vm586_vm10 = vcmask 293888   ;;  %s372_s28 = scalar_lea.vmem %s1485_s3, %s1213_s15  ;;  %s382_s13 = scalar_lea.vmem %s1491_s9, %s1213_s15 }
   0xf   : > { %526 = vrot.lane.b32.xlu1 %v1210_v0, %s1133_s16  ;;  %509 = vrot.lane.b32.xlu0 %v1210_v0, %s1134_s17  ;;  %v390_v1 = vcombine.high %v1210_v0, %v1210_v0  ;;  %v679_v2 = vld [vmem:[%s363_s20] sm:$0xf]  ;;  %v464_v13 = vsub.s32 4, %v1247_v12  ;;  %v484_v21 = vsub.s32 5, %v1247_v12  ;;  %vm530_vm0 = vcmp.lt.s32.totalorder %v1260_v16, 111 }
  0x10   : > { %v1225_v3 = vunpack.c.l.bf16 %v679_v2  ;;  %v1253_v14 = vld [vmem:[%s1484_s2] sm:$0xff]  ;;  %v518_v22 = vsub.s32 7, %v1247_v12  ;;  %vm479_vm2 = vcmp.lt.s32.totalorder %v1260_v16, 127  ;;  %v501_v27 = vsub.s32 6, %v1247_v12 }
  0x11   : > { %v465_v19 = vrot.slane %v1253_v14, %v464_v13  ;;  %v469_v20 = vrot.slane %v1258_v15, %v464_v13  ;;  %v1286_v31 = vrot.slane %v1258_v15, %v484_v21  ;;  %vm513_vm3 = vcmp.lt.s32.totalorder %v1260_v16, 112 }
  0x12   : > { %v682_v4 = vcombine.high %v1225_v3, %v1225_v3  ;;  %v1292_v34 = vrot.slane %v1253_v14, %v518_v22  ;;  %v1295_v35 = vrot.slane %v1258_v15, %v518_v22  ;;  %v1298_v36 = vrot.slane %v1253_v14, %v484_v21 }
  0x13   : > { %475 = vrot.lane.b32.xlu0 %v1210_v0, %s1135_s21  ;;  %528 = vrot.lane.b32.xlu1 %v390_v1, %s1133_s16  ;;  %v1279_v28 = vcombine.low %v465_v19, %v469_v20  ;;  %vm496_vm4 = vcmp.lt.s32.totalorder %v1260_v16, 113  ;;  %v1303_v39 = vrot.slane %v1253_v14, %v501_v27  ;;  %v1320_v48 = vrot.slane %v1258_v15, %v501_v27 }
  0x14   : > { %v1082_v5 = vpack.i.bf16 %v682_v4, %v1225_v3  ;;  %vm449_vm5 = vcmp.lt.s32.totalorder %v1260_v16, 1  ;;  %vm415_vm6 = vcmp.lt.s32.totalorder %v1260_v16, 16  ;;  %vm432_vm7 = vcmp.lt.s32.totalorder %v1260_v16, 15 }
  0x15   : > { %v474_v40 = vmul.f32 %v1279_v28, %v1210_v0  ;;  %vm398_vm9 = vcmp.lt.s32.totalorder %v1260_v16, 17 }
  0x17   : > { %477 = vrot.lane.b32.xlu1 %v390_v1, %s1135_s21  ;;  %511 = vrot.lane.b32.xlu0 %v390_v1, %s1134_s17  ;;  %v556_v55 = vcombine.high %v474_v40, %v474_v40 }
  0x1b   : > { %494 = vrot.lane.b32.xlu1 %v390_v1, %s1136_s22  ;;  %492 = vrot.lane.b32.xlu0 %v1210_v0, %s1136_s22 }
  0x1f   : > { %447 = vrot.lane.b32.xlu1 %v390_v1, %s1137_s23  ;;  %445 = vrot.lane.b32.xlu0 %v1210_v0, %s1137_s23 }
  0x23   : > { %411 = vrot.lane.b32.xlu1 %v1210_v0, %s1138_s24  ;;  %1083 = vrot.lane.b32.xlu0 %v1082_v5, %s1133_s16  ;;  %s377_s16 = scalar_lea.vmem %s1490_s8, %s1060_s11 }
  0x27   : > { %428 = vrot.lane.b32.xlu1 %v1210_v0, %s1139_s25  ;;  %413 = vrot.lane.b32.xlu0 %v390_v1, %s1138_s24 }
  0x2b   : > { %1088 = vrot.lane.b32.xlu1 %v1082_v5, %s1135_s21  ;;  %430 = vrot.lane.b32.xlu0 %v390_v1, %s1139_s25 }
  0x2f   : > { %392 = vrot.lane.b32.xlu1 %v1210_v0, %s1141_s26  ;;  %1093 = vrot.lane.b32.xlu0 %v1082_v5, %s1134_s17 }
  0x33   : > { %1098 = vrot.lane.b32.xlu1 %v1082_v5, %s1136_s22  ;;  %394 = vrot.lane.b32.xlu0 %v390_v1, %s1141_s26  ;;  %v454_v1 = vsub.s32 3, %v1247_v12 }
  0x35   : > { %v1337_v11 = vrot.slane %v1253_v14, %v454_v1  ;;  %v1340_v13 = vrot.slane %v1258_v15, %v454_v1 }
  0x37   : > { %1108 = vrot.lane.b32.xlu1 %v1082_v5, %s1137_s23  ;;  %1103 = vrot.lane.b32.xlu0 %v1082_v5, %s1138_s24 }
  0x3b   : > { %1118 = vrot.lane.b32.xlu1 %v1082_v5, %s1139_s25  ;;  %1113 = vrot.lane.b32.xlu0 %v1082_v5, %s1141_s26 }
  0x3f   : > { %583 = vperm.xlu0 %1122, %v580_v8   ;;  %895 = vperm.xlu1 %1123, %v892_v9  }
  0x43   : > { %903 = vperm.xlu1 %1123, %v900_v10   ;;  %v437_v10 = vsub.s32 2, %v1247_v12 }
  0x81   : > { %v527_v17 = vpop.permute.xlu1 %526  ;;  %v510_v18 = vpop.permute.xlu0 %509 }
  0x85   : > { %v476_v25 = vpop.permute.xlu0 %475  ;;  %v529_v26 = vpop.permute.xlu1 %528 }
  0x86   : > { %v531_v29 = vsel %vm530_vm0, %v527_v17, %v529_v26  ;;  %v532_v30 = vsel %vm530_vm0, %v529_v26, %v527_v17  ;;  %v1343_v17 = vsub.s32 1, %v1247_v12 }
  0x87   : > { %v541_v32 = vmul.f32 %v1270_v23, %v531_v29  ;;  %v542_v33 = vmul.f32 %v1275_v24, %v532_v30  ;;  %v1358_v29 = vrot.slane %v1253_v14, %v437_v10  ;;  %v1361_v30 = vrot.slane %v1258_v15, %v437_v10 }
  0x89   : > { %1043 = vmatprep.subr.msk.mxu0 %vm570_vm1, %v542_v33  ;;  %v478_v37 = vpop.permute.xlu1 %477  ;;  %v512_v38 = vpop.permute.xlu0 %511 }
  0x8a   : > { %v480_v41 = vsel %vm479_vm2, %v476_v25, %v478_v37  ;;  %v481_v42 = vsel %vm479_vm2, %v478_v37, %v476_v25  ;;  %v514_v43 = vsel %vm513_vm3, %v510_v18, %v512_v38  ;;  %v515_v44 = vsel %vm513_vm3, %v512_v38, %v510_v18  ;;  %1044 = vmatpush1.msk.msra.mxu0 %vm570_vm1, %v541_v32 }
  0x8b   : > { %v491_v45 = vmul.f32 %v1286_v31, %v481_v42  ;;  %v524_v46 = vmul.f32 %v1292_v34, %v514_v43  ;;  %v525_v47 = vmul.f32 %v1295_v35, %v515_v44  ;;  %v490_v49 = vmul.f32 %v1298_v36, %v480_v41 }
  0x8d   : > { %v495_v50 = vpop.permute.xlu1 %494  ;;  %v493_v51 = vpop.permute.xlu0 %492  ;;  %v561_v52 = vrot.slane %v491_v45, 4  ;;  %v566_v56 = vrot.slane %v524_v46, 4  ;;  %v567_v57 = vrot.slane %v525_v47, 4  ;;  %v560_v60 = vrot.slane %v490_v49, 4 }
  0x8e   : > { %v497_v53 = vsel %vm496_vm4, %v493_v51, %v495_v50  ;;  %v498_v54 = vsel %vm496_vm4, %v495_v50, %v493_v51  ;;  %v403_v45 = vsub.s32 0, %v1247_v12 }
  0x8f   : > { %v507_v58 = vmul.f32 %v1303_v39, %v497_v53  ;;  %v508_v59 = vmul.f32 %v1320_v48, %v498_v54  ;;  %v576_v2 = vsel %vm570_vm1, %v556_v55, %v561_v52  ;;  %v575_v4 = vsel %vm570_vm1, %v474_v40, %v560_v60 }
  0x91   : > { %v448_v61 = vpop.permute.xlu1 %447  ;;  %v446_v62 = vpop.permute.xlu0 %445  ;;  %v578_v63 = vsel %vm570_vm1, %v508_v59, %v567_v57  ;;  %v577_v0 = vsel %vm570_vm1, %v507_v58, %v566_v56  ;;  %v716_v56 = vmul.f32 %v1225_v3, %v1279_v28  ;;  %v1398_v3 = vrot.slane %v1253_v14, %v403_v45 }
  0x92   : > { %620 = vmatprep.subr.mxu0 %v578_v63  ;;  %v450_v18 = vsel %vm449_vm5, %v446_v62, %v448_v61  ;;  %v451_v19 = vsel %vm449_vm5, %v448_v61, %v446_v62  ;;  %v1401_v28 = vrot.slane %v1258_v15, %v403_v45 }
  0x93   : > { %621 = vmatpush1.msra.mxu0 %v577_v0  ;;  %v460_v32 = vmul.f32 %v1337_v11, %v451_v19  ;;  %v461_v33 = vmul.f32 %v1340_v13, %v450_v18 }
  0x94   : > { %622 = vmatprep.subr.mxu0 %v576_v2 }
  0x95   : > { %v412_v5 = vpop.permute.xlu1 %411  ;;  %623 = vmatpush1.msra.mxu0 %v575_v4  ;;  %v1084_v7 = vpop.permute.xlu0 %1083  ;;  %v551_v51 = vrot.slane %v460_v32, 4  ;;  %v552_v52 = vrot.slane %v461_v33, 4 }
  0x96   : > { %v1086_v8 = vunpack.i.h.bf16 %v1084_v7  ;;  %v1085_v9 = vunpack.i.l.bf16 %v1084_v7  ;;  %v762_v7 = vcombine.high %v716_v56, %v716_v56 }
  0x98   : > { %v746_v20 = vsel %vm530_vm0, %v1086_v8, %v1085_v9  ;;  %v745_v21 = vsel %vm530_vm0, %v1085_v9, %v1086_v8 }
  0x99   : > { %v429_v22 = vpop.permute.xlu1 %428  ;;  %v414_v25 = vpop.permute.xlu0 %413  ;;  %v748_v26 = vmul.f32 %v1275_v24, %v746_v20  ;;  %v747_v27 = vmul.f32 %v1270_v23, %v745_v21  ;;  %v1367_v24 = vrot.slane %v1253_v14, %v1343_v17  ;;  %v1371_v23 = vrot.slane %v1258_v15, %v1343_v17 }
  0x9a   : > { %v416_v40 = vsel %vm415_vm6, %v412_v5, %v414_v25  ;;  %v417_v41 = vsel %vm415_vm6, %v414_v25, %v412_v5 }
  0x9b   : > { %v789_v37 = vpack.c.bf16 %v748_v26, %v748_v26  ;;  %v788_v38 = vpack.c.bf16 %v747_v27, %v747_v27  ;;  %v426_v57 = vmul.f32 %v1367_v24, %v417_v41  ;;  %v427_v58 = vmul.f32 %v1371_v23, %v416_v40 }
  0x9d   : > { %v1089_v42 = vpop.permute.xlu1 %1088  ;;  %v431_v43 = vpop.permute.xlu0 %430  ;;  %1047 = vmatprep.subr.msk.bf16.mxu1 %vm794_vm8, %v789_v37  ;;  %v796_v44 = vsel %vm794_vm8, %v788_v38, 0  ;;  %v545_v8 = vrot.slane %v426_v57, 4  ;;  %v546_v9 = vrot.slane %v427_v58, 4 }
  0x9e   : > { %v1091_v46 = vunpack.i.h.bf16 %v1089_v42  ;;  %v1090_v47 = vunpack.i.l.bf16 %v1089_v42  ;;  %v433_v49 = vsel %vm432_vm7, %v429_v22, %v431_v43  ;;  %v434_v50 = vsel %vm432_vm7, %v431_v43, %v429_v22  ;;  %812 = vmatpush1.bf16.msra.mxu1 %v796_v44  ;;  %v579_v43 = vld [vmem:[%s1486_s4] sm:$0x3] }
  0x9f   : > { %v443_v53 = vmul.f32 %v1358_v29, %v434_v50  ;;  %v444_v54 = vmul.f32 %v1361_v30, %v433_v49 }
  0xa0   : > { %v721_v55 = vsel %vm479_vm2, %v1090_v47, %v1091_v46  ;;  %v722_v12 = vsel %vm479_vm2, %v1091_v46, %v1090_v47 }
  0xa1   : > { %v393_v59 = vpop.permute.xlu1 %392  ;;  %v1094_v60 = vpop.permute.xlu0 %1093  ;;  %v574_v61 = vsel %vm570_vm1, %v444_v54, %v552_v52  ;;  %v573_v62 = vsel %vm570_vm1, %v443_v53, %v551_v51  ;;  %v723_v1 = vmul.f32 %v721_v55, %v1298_v36  ;;  %v724_v2 = vmul.f32 %v722_v12, %v1286_v31 }
  0xa2   : > { %v1096_v63 = vunpack.i.h.bf16 %v1094_v60  ;;  %v1095_v0 = vunpack.i.l.bf16 %v1094_v60  ;;  %624 = vmatprep.subr.mxu0 %v574_v61 }
  0xa3   : > { %625 = vmatpush1.msra.mxu0 %v573_v62  ;;  %v766_v21 = vrot.slane %v723_v1, 4  ;;  %v767_v22 = vrot.slane %v724_v2, 4 }
  0xa4   : > { %v737_v4 = vsel %vm513_vm3, %v1095_v0, %v1096_v63  ;;  %v738_v5 = vsel %vm513_vm3, %v1096_v63, %v1095_v0 }
  0xa5   : > { %v739_v36 = vmul.f32 %v737_v4, %v1292_v34  ;;  %v740_v31 = vmul.f32 %v738_v5, %v1295_v35  ;;  %v1099_v10 = vpop.permute.xlu1 %1098  ;;  %v395_v14 = vpop.permute.xlu0 %394  ;;  %v780_v49 = vsel %vm570_vm1, %v716_v56, %v766_v21 }
  0xa6   : > { %v1101_v18 = vunpack.i.h.bf16 %v1099_v10  ;;  %v1100_v19 = vunpack.i.l.bf16 %v1099_v10  ;;  %v399_v15 = vsel %vm398_vm9, %v393_v59, %v395_v14  ;;  %v400_v20 = vsel %vm398_vm9, %v395_v14, %v393_v59 }
  0xa7   : > { %v409_v25 = vmul.f32 %v1398_v3, %v400_v20  ;;  %v410_v26 = vmul.f32 %v1401_v28, %v399_v15  ;;  %v772_v27 = vrot.slane %v739_v36, 4  ;;  %v773_v34 = vrot.slane %v740_v31, 4 }
  0xa8   : > { %v729_v35 = vsel %vm496_vm4, %v1100_v19, %v1101_v18  ;;  %v730_v32 = vsel %vm496_vm4, %v1101_v18, %v1100_v19 }
  0xa9   : > { %v731_v33 = vmul.f32 %v729_v35, %v1303_v39  ;;  %v732_v37 = vmul.f32 %v730_v32, %v1320_v48  ;;  %v1109_v38 = vpop.permute.xlu1 %1108  ;;  %v1104_v40 = vpop.permute.xlu0 %1103  ;;  %v572_v41 = vsel %vm570_vm1, %v410_v26, %v546_v9  ;;  %v571_v42 = vsel %vm570_vm1, %v409_v25, %v545_v8 }
  0xaa   : > { %v1111_v44 = vunpack.i.h.bf16 %v1109_v38  ;;  %v1110_v45 = vunpack.i.l.bf16 %v1109_v38  ;;  %v1106_v46 = vunpack.i.h.bf16 %v1104_v40  ;;  %v1105_v47 = vunpack.i.l.bf16 %v1104_v40  ;;  %626 = vmatprep.subr.mxu0 %v572_v41 }
  0xab   : > { %627 = vmatpush1.msra.mxu0 %v571_v42  ;;  %v781_v39 = vsel %vm570_vm1, %v762_v7, %v767_v22  ;;  %v783_v48 = vsel %vm570_vm1, %v732_v37, %v773_v34  ;;  %v782_v50 = vsel %vm570_vm1, %v731_v33, %v772_v27  ;;  %v1143_v34 = vmov 1.0  }
  0xac   : > { %v712_v51 = vsel %vm449_vm5, %v1110_v45, %v1111_v44  ;;  %v713_v52 = vsel %vm449_vm5, %v1111_v44, %v1110_v45  ;;  %v696_v53 = vsel %vm415_vm6, %v1105_v47, %v1106_v46  ;;  %v697_v54 = vsel %vm415_vm6, %v1106_v46, %v1105_v47  ;;  %1045 = vmatmul.mubr.msk.f32.vlgmr.msra.gmra.mxu0 %vm586_vm10, %v579_v43 }
  0xad   : > { %v714_v55 = vmul.f32 %v713_v52, %v1337_v11  ;;  %v715_v12 = vmul.f32 %v712_v51, %v1340_v13  ;;  %v698_v56 = vmul.f32 %v697_v54, %v1367_v24  ;;  %v699_v57 = vmul.f32 %v696_v53, %v1371_v23  ;;  %v1119_v58 = vpop.permute.xlu1 %1118  ;;  %v1114_v59 = vpop.permute.xlu0 %1113 }
  0xae   : > { %v1121_v60 = vunpack.i.h.bf16 %v1119_v58  ;;  %v1120_v61 = vunpack.i.l.bf16 %v1119_v58  ;;  %v1116_v62 = vunpack.i.h.bf16 %v1114_v59  ;;  %v1115_v63 = vunpack.i.l.bf16 %v1114_v59 }
  0xaf   : > { %v757_v0 = vrot.slane %v714_v55, 4  ;;  %v758_v1 = vrot.slane %v715_v12, 4  ;;  %v751_v2 = vrot.slane %v698_v56, 4  ;;  %v752_v4 = vrot.slane %v699_v57, 4 }
  0xb0   : > { %v704_v5 = vsel %vm432_vm7, %v1120_v61, %v1121_v60  ;;  %v705_v11 = vsel %vm432_vm7, %v1121_v60, %v1120_v61  ;;  %v688_v13 = vsel %vm398_vm9, %v1115_v63, %v1116_v62  ;;  %v689_v24 = vsel %vm398_vm9, %v1116_v62, %v1115_v63 }
  0xb1   : > { %v706_v23 = vmul.f32 %v705_v11, %v1358_v29  ;;  %v707_v7 = vmul.f32 %v704_v5, %v1361_v30  ;;  %v690_v8 = vmul.f32 %v689_v24, %v1398_v3  ;;  %v691_v9 = vmul.f32 %v688_v13, %v1401_v28  ;;  %v790_v30 = vld [vmem:[%s372_s28] sm:$0xf] }
  0xb2   : > { %v787_v36 = vpack.c.bf16 %v783_v48, %v781_v39  ;;  %v786_v31 = vpack.c.bf16 %v782_v50, %v780_v49 }
  0xb3   : > { %v777_v10 = vsel %vm570_vm1, %v691_v9, %v752_v4  ;;  %v779_v14 = vsel %vm570_vm1, %v707_v7, %v758_v1  ;;  %v776_v18 = vsel %vm570_vm1, %v690_v8, %v751_v2  ;;  %v778_v16 = vsel %vm570_vm1, %v706_v23, %v757_v0 }
  0xb4   : > { %813 = vmatprep.subr.bf16.mxu1 %v787_v36  ;;  %v785_v19 = vpack.c.bf16 %v779_v14, %v777_v10  ;;  %v784_v29 = vpack.c.bf16 %v778_v16, %v776_v18 }
  0xb5   : > { %814 = vmatpush1.bf16.msra.mxu1 %v786_v31 }
  0xb6   : > { %815 = vmatprep.subr.bf16.mxu1 %v785_v19 }
  0xb9   : > { %816 = vmatpush1.bf16.msra.mxu1 %v784_v29 }
  0xba   : > { %v584_v3 = vpop.permute.xlu0 %583  ;;  %v896_v43 = vpop.permute.xlu1 %895 }
  0xbc   : > { %1048 = vmatmul.mubr.msk.bf16.vlgmr.msra.gmra.mxu1 %vm586_vm10, %v790_v30 }
  0xbe   : > { %v904_v54 = vpop.permute.xlu1 %903 }
 0x16c   : > { %v662_v28 = vpop.f32.mrf.mxu0 }
 0x16d   : > { %v663_v15 = vadd.f32 %v662_v28, %v584_v3 }
 0x16e   : > { %v664_v20 = vpop.f32.mrf.mxu0 }
 0x16f   : > { %v665_v21 = vadd.f32 %v664_v20, %v584_v3  ;;  %v842_v25 = vrot.slane %v663_v15, 7 }
 0x171   : > { %v669_v22 = vcombine.low %v663_v15, %v665_v21  ;;  %v843_v26 = vrot.slane %v665_v21, 7  ;;  %vm846_vm11 = vcmp.gt.f32.partialorder %v663_v15, %v842_v25 }
 0x172   : > { %v1055_v27 = vsel %vm846_vm11, 1.0, %v1140_v6  ;;  %v1053_v35 = vsel %vm846_vm11, 0.0, %v1143_v34 }
 0x173   : > { %1046 = vst.sshfl [vmem:[%s382_s13] sm:$0x33 pattern:$0x76325410] %v669_v22  ;;  %vm847_vm12 = vcmp.gt.f32.partialorder %v665_v21, %v843_v26  ;;  %v877_v33 = vrot.slane %v1055_v27, %v1343_v17  ;;  %v859_v40 = vrot.slane %v1053_v35, %v1343_v17 }
 0x174   : > { %v1056_v32 = vsel %vm847_vm12, 1.0, %v1140_v6  ;;  %v1054_v38 = vsel %vm847_vm12, 0.0, %v1143_v34 }
 0x175   : > { %v881_v42 = vrot.slane %v1056_v32, %v1343_v17  ;;  %v863_v47 = vrot.slane %v1054_v38, %v1343_v17 }
 0x17c   : > { %v835_v37 = vpop.f32.mrf.mxu1 }
 0x17d   : > { %v882_v41 = vmul.f32 %v877_v33, %v835_v37  ;;  %v864_v45 = vmul.f32 %v859_v40, %v835_v37 }
 0x17e   : > { %v837_v44 = vpop.f32.mrf.mxu1 }
 0x17f   : > { %v886_v46 = vrot.slane %v882_v41, 4  ;;  %v883_v39 = vmul.f32 %v881_v42, %v837_v44  ;;  %v865_v6 = vmul.f32 %v863_v47, %v837_v44 }
 0x180   : > { %v839_v48 = vpop.f32.mrf.mxu1 }
 0x181   : > { %v890_v49 = vadd.f32 %v886_v46, %v864_v45  ;;  %v887_v50 = vrot.slane %v883_v39, 4 }
 0x182   : > { %v840_v51 = vpop.f32.mrf.mxu1 }
 0x183   : > { %v898_v52 = vmul.f32 %v896_v43, %v890_v49  ;;  %v891_v53 = vadd.f32 %v887_v50, %v865_v6 }
 0x185   : > { %v899_v55 = vmul.f32 %v896_v43, %v891_v53  ;;  %v906_v12 = vadd.f32 %v904_v54, %v898_v52 }
 0x187   : > { %v907_v56 = vadd.f32 %v904_v54, %v899_v55  ;;  %v908_v57 = vmax.f32 %v906_v12, 0.0 }
 0x189   : > { %v909_v58 = vmax.f32 %v907_v56, 0.0 }
 0x18b   : > { %v912_v17 = vcombine.low %v908_v57, %v909_v58 }
 0x18d   : > { %914 = vst [vmem:[%s377_s16] sm:$0xff] %v912_v17 }
 0x18e PF: > { %s20_s30 = sadd.s32 1, %s1131_s30  }
 0x18f   : > { %p17_p4 = scmp.ge.s32.totalorder %s20_s30, 4  }
 0x191   :  { %19 = sbr.rel (!%p17_p4) target bundleno = 1 (0x1), region = 100 }

</bundles_post_ra>
